<compile_context>
chip_gen: v7x
topology: tpu7x:2x2x1
jax: 0.10.0
libtpu: 0.0.40
codegen_flags: <defaults>
</compile_context>

<pallas_src>
import functools
import jax
import jax.numpy as jnp
from jax.experimental import pallas as pl
from jax.experimental.pallas import tpu as pltpu


# ----------------------------- Fused layer kernel ---------------------------

def _decoder_layer_kernel(
    dec_ref, enc_ref, tmask_ref, smask_ref,
    wqkv1_ref, bqkv1_ref, wo1_ref, bo1_ref,
    wq2_ref, bq2_ref, wkv2_ref, bkv2_ref, wo2_ref, bo2_ref,
    w1_ref, b1_ref, w2_ref, b2_ref,
    g_ref, beta_ref,
    out_ref,
    *, n_head, eps):
    S, D = dec_ref.shape
    dh = D // n_head
    scale = float(dh) ** -0.5          # Python float: no captured jnp constant

    x = dec_ref[...].astype(jnp.float32)        # [S, D]
    enc = enc_ref[...].astype(jnp.float32)      # [S, D]
    gamma = g_ref[...].astype(jnp.float32)      # [1, D]
    beta = beta_ref[...].astype(jnp.float32)    # [1, D]

    def add_layernorm(y, res):
        y = y + res
        mean = jnp.mean(y, axis=-1, keepdims=True)
        var = jnp.mean((y - mean) ** 2, axis=-1, keepdims=True)   # biased (torch LN)
        return (y - mean) * jax.lax.rsqrt(var + eps) * gamma + beta

    def mha_core(q, k, v, mask):
        # q/k/v: [S, D]; mask: [S_q, S_k].  Per-head math via static lane slices
        # (no reshapes/transposes through HBM).
        outs = []
        for h in range(n_head):
            sl = slice(h * dh, (h + 1) * dh)
            qh, kh, vh = q[:, sl], k[:, sl], v[:, sl]
            s = jax.lax.dot_general(                      # q @ k^T
                qh, kh, (((1,), (1,)), ((), ())),
                preferred_element_type=jnp.float32) * scale
            s = jnp.where(mask == 0, jnp.float32(-1e9), s)     # masked_fill(mask==0, -1e9)
            s = s - jnp.max(s, axis=-1, keepdims=True)
            p = jnp.exp(s)
            p = p * pl.reciprocal(jnp.sum(p, axis=-1, keepdims=True), approx=True)
            outs.append(jnp.dot(p, vh, preferred_element_type=jnp.float32))
        return jnp.concatenate(outs, axis=-1)              # [S, D]

    # ---- masked self-attention (fused QKV matmul) + residual + LayerNorm ----
    qkv = (jnp.dot(x, wqkv1_ref[...].astype(jnp.float32),
                   preferred_element_type=jnp.float32)
           + bqkv1_ref[...].astype(jnp.float32))           # [S, 3D]
    attn = mha_core(qkv[:, :D], qkv[:, D:2 * D], qkv[:, 2 * D:], tmask_ref[...])
    attn = (jnp.dot(attn, wo1_ref[...].astype(jnp.float32),
                    preferred_element_type=jnp.float32)
            + bo1_ref[...].astype(jnp.float32))
    x = add_layernorm(attn, x)

    # ---- cross-attention (fused KV matmul) + residual + LayerNorm ----
    q = (jnp.dot(x, wq2_ref[...].astype(jnp.float32),
                 preferred_element_type=jnp.float32)
         + bq2_ref[...].astype(jnp.float32))
    kv = (jnp.dot(enc, wkv2_ref[...].astype(jnp.float32),
                  preferred_element_type=jnp.float32)
          + bkv2_ref[...].astype(jnp.float32))             # [S, 2D]
    attn = mha_core(q, kv[:, :D], kv[:, D:], smask_ref[...])
    attn = (jnp.dot(attn, wo2_ref[...].astype(jnp.float32),
                    preferred_element_type=jnp.float32)
            + bo2_ref[...].astype(jnp.float32))
    x = add_layernorm(attn, x)

    # ---- feed-forward (w1 -> ReLU -> w2, hidden kept in VMEM) + res + LN ----
    # TODO(synk): dropout1/2/3 are identity (inference mode); training-mode dropout not implemented.
    hdn = jnp.maximum(
        jnp.dot(x, w1_ref[...].astype(jnp.float32),
                preferred_element_type=jnp.float32)
        + b1_ref[...].astype(jnp.float32), 0.0)            # [S, hidden]
    ff = (jnp.dot(hdn, w2_ref[...].astype(jnp.float32),
                  preferred_element_type=jnp.float32)
          + b2_ref[...].astype(jnp.float32))
    x = add_layernorm(ff, x)

    out_ref[...] = x.astype(out_ref.dtype)


# ------------------------------ Python wrapper -------------------------------

def decoder_layer(params, encoder_output, decoder_input, trg_mask, src_mask, n_head):
    B, S, D = decoder_input.shape
    Hid = params["ffn"]["w1"].shape[1]
    a1, a2, ffn = params["attn1"], params["attn2"], params["ffn"]

    # One-time (wrapper-side) weight packing: fused QKV / KV projections.
    wqkv1 = jnp.concatenate([a1["wq"], a1["wk"], a1["wv"]], axis=1)      # [D, 3D]
    bqkv1 = jnp.concatenate([a1["bq"], a1["bk"], a1["bv"]])[None, :]     # [1, 3D]
    wkv2 = jnp.concatenate([a2["wk"], a2["wv"]], axis=1)                 # [D, 2D]
    bkv2 = jnp.concatenate([a2["bk"], a2["bv"]])[None, :]                # [1, 2D]

    def full(shape):
        # Weight / bias blocks: full array, resident across the batch grid
        # (same block index every step -> Pallas skips the re-DMA).
        return pl.BlockSpec(shape, lambda b: (0,) * len(shape))

    act_spec = pl.BlockSpec((None, S, D), lambda b: (b, 0, 0))           # kernel sees [S, D]
    mask_spec = pl.BlockSpec((None, None, S, S), lambda b: (b, 0, 0, 0)) # kernel sees [S, S]

    kernel = functools.partial(_decoder_layer_kernel, n_head=n_head, eps=1e-5)

    return pl.pallas_call(
        kernel,
        out_shape=jax.ShapeDtypeStruct((B, S, D), decoder_input.dtype),
        grid=(B,),
        in_specs=[
            act_spec, act_spec, mask_spec, mask_spec,
            full((D, 3 * D)), full((1, 3 * D)), full((D, D)), full((1, D)),
            full((D, D)), full((1, D)), full((D, 2 * D)), full((1, 2 * D)),
            full((D, D)), full((1, D)),
            full((D, Hid)), full((1, Hid)), full((Hid, D)), full((1, D)),
            full((1, D)), full((1, D)),
        ],
        out_specs=act_spec,
        compiler_params=pltpu.CompilerParams(dimension_semantics=("parallel",)),
    )(decoder_input, encoder_output, trg_mask, src_mask,
      wqkv1, bqkv1, a1["wo"], a1["bo"][None, :],
      a2["wq"], a2["bq"][None, :], wkv2, bkv2, a2["wo"], a2["bo"][None, :],
      ffn["w1"], ffn["b1"][None, :], ffn["w2"], ffn["b2"][None, :],
      params["ln1_g"][None, :], params["ln1_b"][None, :])


# ------------------------------ Param init ---------------------------------

def init_params(key, dim_vector, dim_hidden):
    D, H = dim_vector, dim_hidden
    keys = jax.random.split(key, 4)

    def attn_params(k):
        k1, k2, k3, k4 = jax.random.split(k, 4)
        s = 0.02
        return dict(
            wq=s * jax.random.normal(k1, (D, D), jnp.float32), bq=jnp.zeros((D,), jnp.float32),
            wk=s * jax.random.normal(k2, (D, D), jnp.float32), bk=jnp.zeros((D,), jnp.float32),
            wv=s * jax.random.normal(k3, (D, D), jnp.float32), bv=jnp.zeros((D,), jnp.float32),
            wo=s * jax.random.normal(k4, (D, D), jnp.float32), bo=jnp.zeros((D,), jnp.float32),
        )

    return dict(
        attn1=attn_params(keys[0]),
        attn2=attn_params(keys[1]),
        ffn=dict(
            w1=0.02 * jax.random.normal(keys[2], (D, H), jnp.float32),
            b1=jnp.zeros((H,), jnp.float32),
            w2=0.02 * jax.random.normal(keys[3], (H, D), jnp.float32),
            b2=jnp.zeros((D,), jnp.float32),
        ),
        # NOTE: the PyTorch forward reuses self.norm1 for all three norms.
        ln1_g=jnp.ones((D,), jnp.float32),
        ln1_b=jnp.zeros((D,), jnp.float32),
    )


# --------------------------------- Main -------------------------------------

if __name__ == "__main__":
    B, S, D, n_head, hidden = 2, 8, 32, 4, 64

    key = jax.random.PRNGKey(0)
    k_enc, k_dec, k_param = jax.random.split(key, 3)

    encoder_output = jax.random.normal(k_enc, (B, S, D), jnp.float32)
    decoder_input = jax.random.normal(k_dec, (B, S, D), jnp.float32)

    # causal mask for self-attention, full-visibility mask for cross-attention
    trg_mask = jnp.broadcast_to(
        jnp.tril(jnp.ones((S, S), jnp.float32))[None, None], (B, 1, S, S))
    src_mask = jnp.ones((B, 1, S, S), jnp.float32)

    params = init_params(k_param, D, hidden)

    out = decoder_layer(params, encoder_output, decoder_input, trg_mask, src_mask, n_head)
    out = jax.block_until_ready(out)
    assert out.shape == (B, S, D)
    print("KERNEL_OK")
</pallas_src>

<mosaic_0001>
module attributes {stable_mosaic.version = 11 : i64} {
  func.func @_decoder_layer_kernel(%arg0: i32, %arg1: memref<1x8x32xf32, #tpu.memory_space<vmem>>, %arg2: memref<1x8x32xf32, #tpu.memory_space<vmem>>, %arg3: memref<1x1x8x8xf32, #tpu.memory_space<vmem>>, %arg4: memref<1x1x8x8xf32, #tpu.memory_space<vmem>>, %arg5: memref<32x96xf32, #tpu.memory_space<vmem>>, %arg6: memref<1x96xf32, #tpu.memory_space<vmem>>, %arg7: memref<32x32xf32, #tpu.memory_space<vmem>>, %arg8: memref<1x32xf32, #tpu.memory_space<vmem>>, %arg9: memref<32x32xf32, #tpu.memory_space<vmem>>, %arg10: memref<1x32xf32, #tpu.memory_space<vmem>>, %arg11: memref<32x64xf32, #tpu.memory_space<vmem>>, %arg12: memref<1x64xf32, #tpu.memory_space<vmem>>, %arg13: memref<32x32xf32, #tpu.memory_space<vmem>>, %arg14: memref<1x32xf32, #tpu.memory_space<vmem>>, %arg15: memref<32x64xf32, #tpu.memory_space<vmem>>, %arg16: memref<1x64xf32, #tpu.memory_space<vmem>>, %arg17: memref<64x32xf32, #tpu.memory_space<vmem>>, %arg18: memref<1x32xf32, #tpu.memory_space<vmem>>, %arg19: memref<1x32xf32, #tpu.memory_space<vmem>>, %arg20: memref<1x32xf32, #tpu.memory_space<vmem>>, %arg21: memref<1x8x32xf32, #tpu.memory_space<vmem>>) attributes {dimension_semantics = [#tpu.dimension_semantics<parallel>], iteration_bounds = array<i64: 2>, scalar_prefetch = 0 : i64, scratch_operands = 0 : i64, tpu.core_type = #tpu.core_type<tc>, window_params = [{transform_indices = @transform_0, window_bounds = array<i64: 1, 8, 32>}, {transform_indices = @transform_1, window_bounds = array<i64: 1, 8, 32>}, {transform_indices = @transform_2, window_bounds = array<i64: 1, 1, 8, 8>}, {transform_indices = @transform_3, window_bounds = array<i64: 1, 1, 8, 8>}, {pipeline_mode = #tpu.pipeline_mode<synchronous>, transform_indices = @transform_4, window_bounds = array<i64: 32, 96>}, {pipeline_mode = #tpu.pipeline_mode<synchronous>, transform_indices = @transform_5, window_bounds = array<i64: 1, 96>}, {pipeline_mode = #tpu.pipeline_mode<synchronous>, transform_indices = @transform_6, window_bounds = array<i64: 32, 32>}, {pipeline_mode = #tpu.pipeline_mode<synchronous>, transform_indices = @transform_7, window_bounds = array<i64: 1, 32>}, {pipeline_mode = #tpu.pipeline_mode<synchronous>, transform_indices = @transform_8, window_bounds = array<i64: 32, 32>}, {pipeline_mode = #tpu.pipeline_mode<synchronous>, transform_indices = @transform_9, window_bounds = array<i64: 1, 32>}, {pipeline_mode = #tpu.pipeline_mode<synchronous>, transform_indices = @transform_10, window_bounds = array<i64: 32, 64>}, {pipeline_mode = #tpu.pipeline_mode<synchronous>, transform_indices = @transform_11, window_bounds = array<i64: 1, 64>}, {pipeline_mode = #tpu.pipeline_mode<synchronous>, transform_indices = @transform_12, window_bounds = array<i64: 32, 32>}, {pipeline_mode = #tpu.pipeline_mode<synchronous>, transform_indices = @transform_13, window_bounds = array<i64: 1, 32>}, {pipeline_mode = #tpu.pipeline_mode<synchronous>, transform_indices = @transform_14, window_bounds = array<i64: 32, 64>}, {pipeline_mode = #tpu.pipeline_mode<synchronous>, transform_indices = @transform_15, window_bounds = array<i64: 1, 64>}, {pipeline_mode = #tpu.pipeline_mode<synchronous>, transform_indices = @transform_16, window_bounds = array<i64: 64, 32>}, {pipeline_mode = #tpu.pipeline_mode<synchronous>, transform_indices = @transform_17, window_bounds = array<i64: 1, 32>}, {pipeline_mode = #tpu.pipeline_mode<synchronous>, transform_indices = @transform_18, window_bounds = array<i64: 1, 32>}, {pipeline_mode = #tpu.pipeline_mode<synchronous>, transform_indices = @transform_19, window_bounds = array<i64: 1, 32>}, {transform_indices = @transform_20, window_bounds = array<i64: 1, 8, 32>}]} {
    %c0 = arith.constant 0 : index
    %c0_0 = arith.constant 0 : index
    %c0_1 = arith.constant 0 : index
    %0 = vector.load %arg1[%c0, %c0_0, %c0_1] : memref<1x8x32xf32, #tpu.memory_space<vmem>>, vector<1x8x32xf32>
    %1 = vector.shape_cast %0 : vector<1x8x32xf32> to vector<8x32xf32>
    %c0_2 = arith.constant 0 : index
    %c0_3 = arith.constant 0 : index
    %c0_4 = arith.constant 0 : index
    %2 = vector.load %arg2[%c0_2, %c0_3, %c0_4] : memref<1x8x32xf32, #tpu.memory_space<vmem>>, vector<1x8x32xf32>
    %3 = vector.shape_cast %2 : vector<1x8x32xf32> to vector<8x32xf32>
    %c0_5 = arith.constant 0 : index
    %c0_6 = arith.constant 0 : index
    %4 = vector.load %arg19[%c0_5, %c0_6] : memref<1x32xf32, #tpu.memory_space<vmem>>, vector<1x32xf32>
    %c0_7 = arith.constant 0 : index
    %c0_8 = arith.constant 0 : index
    %5 = vector.load %arg20[%c0_7, %c0_8] : memref<1x32xf32, #tpu.memory_space<vmem>>, vector<1x32xf32>
    %c0_9 = arith.constant 0 : index
    %c0_10 = arith.constant 0 : index
    %6 = vector.load %arg5[%c0_9, %c0_10] : memref<32x96xf32, #tpu.memory_space<vmem>>, vector<32x96xf32>
    %cst = arith.constant dense<0.000000e+00> : vector<8x96xf32>
    %7 = tpu.matmul %1, %6, %cst {dimension_numbers = #tpu.dot_dimension_numbers<[1], [0], [0], [1], [0, 0, 1, 1], [], []>} : vector<8x32xf32>, vector<32x96xf32>, vector<8x96xf32> -> vector<8x96xf32>
    %c0_11 = arith.constant 0 : index
    %c0_12 = arith.constant 0 : index
    %8 = vector.load %arg6[%c0_11, %c0_12] : memref<1x96xf32, #tpu.memory_space<vmem>>, vector<1x96xf32>
    %9 = vector.broadcast %8 : vector<1x96xf32> to vector<8x96xf32>
    %10 = arith.addf %7, %9 : vector<8x96xf32>
    %11 = vector.extract_strided_slice %10 {offsets = [0, 0], sizes = [8, 32], strides = [1, 1]} : vector<8x96xf32> to vector<8x32xf32>
    %12 = vector.extract_strided_slice %10 {offsets = [0, 32], sizes = [8, 32], strides = [1, 1]} : vector<8x96xf32> to vector<8x32xf32>
    %13 = vector.extract_strided_slice %10 {offsets = [0, 64], sizes = [8, 32], strides = [1, 1]} : vector<8x96xf32> to vector<8x32xf32>
    %c0_13 = arith.constant 0 : index
    %c0_14 = arith.constant 0 : index
    %c0_15 = arith.constant 0 : index
    %c0_16 = arith.constant 0 : index
    %14 = vector.load %arg3[%c0_13, %c0_14, %c0_15, %c0_16] : memref<1x1x8x8xf32, #tpu.memory_space<vmem>>, vector<1x1x8x8xf32>
    %15 = vector.shape_cast %14 : vector<1x1x8x8xf32> to vector<8x8xf32>
    %16 = vector.extract_strided_slice %11 {offsets = [0, 0], sizes = [8, 8], strides = [1, 1]} : vector<8x32xf32> to vector<8x8xf32>
    %17 = vector.extract_strided_slice %12 {offsets = [0, 0], sizes = [8, 8], strides = [1, 1]} : vector<8x32xf32> to vector<8x8xf32>
    %18 = vector.extract_strided_slice %13 {offsets = [0, 0], sizes = [8, 8], strides = [1, 1]} : vector<8x32xf32> to vector<8x8xf32>
    %cst_17 = arith.constant dense<0.000000e+00> : vector<8x8xf32>
    %19 = tpu.matmul %16, %17, %cst_17 {dimension_numbers = #tpu.dot_dimension_numbers<[1], [1], [0], [0], [0, 0, 1, 0], [], []>} : vector<8x8xf32>, vector<8x8xf32>, vector<8x8xf32> -> vector<8x8xf32>
    %cst_18 = arith.constant 0.353553385 : f32
    %20 = vector.broadcast %cst_18 : f32 to vector<8x8xf32>
    %21 = arith.mulf %19, %20 : vector<8x8xf32>
    %cst_19 = arith.constant 0.000000e+00 : f32
    %22 = vector.broadcast %cst_19 : f32 to vector<8x8xf32>
    %23 = arith.cmpf oeq, %15, %22 : vector<8x8xf32>
    %cst_20 = arith.constant -1.000000e+09 : f32
    %24 = vector.broadcast %cst_20 : f32 to vector<8x8xf32>
    %25 = arith.select %23, %24, %21 : vector<8x8xi1>, vector<8x8xf32>
    %cst_21 = arith.constant dense<0xFF800000> : vector<8xf32>
    %26 = vector.multi_reduction <maximumf>, %25, %cst_21 [1] : vector<8x8xf32> to vector<8xf32>
    %27 = vector.shape_cast %26 : vector<8xf32> to vector<8x1xf32>
    %28 = vector.broadcast %27 : vector<8x1xf32> to vector<8x8xf32>
    %29 = arith.subf %25, %28 : vector<8x8xf32>
    %30 = math.exp %29 : vector<8x8xf32>
    %cst_22 = arith.constant dense<0.000000e+00> : vector<8xf32>
    %31 = vector.multi_reduction <add>, %30, %cst_22 [1] : vector<8x8xf32> to vector<8xf32>
    %32 = vector.shape_cast %31 : vector<8xf32> to vector<8x1xf32>
    %33 = tpu.reciprocal %32 {approx = true} : vector<8x1xf32> -> vector<8x1xf32>
    %34 = vector.broadcast %33 : vector<8x1xf32> to vector<8x8xf32>
    %35 = arith.mulf %30, %34 : vector<8x8xf32>
    %cst_23 = arith.constant dense<0.000000e+00> : vector<8x8xf32>
    %36 = tpu.matmul %35, %18, %cst_23 {dimension_numbers = #tpu.dot_dimension_numbers<[1], [0], [0], [1], [0, 0, 1, 1], [], []>} : vector<8x8xf32>, vector<8x8xf32>, vector<8x8xf32> -> vector<8x8xf32>
    %37 = vector.extract_strided_slice %11 {offsets = [0, 8], sizes = [8, 8], strides = [1, 1]} : vector<8x32xf32> to vector<8x8xf32>
    %38 = vector.extract_strided_slice %12 {offsets = [0, 8], sizes = [8, 8], strides = [1, 1]} : vector<8x32xf32> to vector<8x8xf32>
    %39 = vector.extract_strided_slice %13 {offsets = [0, 8], sizes = [8, 8], strides = [1, 1]} : vector<8x32xf32> to vector<8x8xf32>
    %cst_24 = arith.constant dense<0.000000e+00> : vector<8x8xf32>
    %40 = tpu.matmul %37, %38, %cst_24 {dimension_numbers = #tpu.dot_dimension_numbers<[1], [1], [0], [0], [0, 0, 1, 0], [], []>} : vector<8x8xf32>, vector<8x8xf32>, vector<8x8xf32> -> vector<8x8xf32>
    %cst_25 = arith.constant 0.353553385 : f32
    %41 = vector.broadcast %cst_25 : f32 to vector<8x8xf32>
    %42 = arith.mulf %40, %41 : vector<8x8xf32>
    %cst_26 = arith.constant 0.000000e+00 : f32
    %43 = vector.broadcast %cst_26 : f32 to vector<8x8xf32>
    %44 = arith.cmpf oeq, %15, %43 : vector<8x8xf32>
    %cst_27 = arith.constant -1.000000e+09 : f32
    %45 = vector.broadcast %cst_27 : f32 to vector<8x8xf32>
    %46 = arith.select %44, %45, %42 : vector<8x8xi1>, vector<8x8xf32>
    %cst_28 = arith.constant dense<0xFF800000> : vector<8xf32>
    %47 = vector.multi_reduction <maximumf>, %46, %cst_28 [1] : vector<8x8xf32> to vector<8xf32>
    %48 = vector.shape_cast %47 : vector<8xf32> to vector<8x1xf32>
    %49 = vector.broadcast %48 : vector<8x1xf32> to vector<8x8xf32>
    %50 = arith.subf %46, %49 : vector<8x8xf32>
    %51 = math.exp %50 : vector<8x8xf32>
    %cst_29 = arith.constant dense<0.000000e+00> : vector<8xf32>
    %52 = vector.multi_reduction <add>, %51, %cst_29 [1] : vector<8x8xf32> to vector<8xf32>
    %53 = vector.shape_cast %52 : vector<8xf32> to vector<8x1xf32>
    %54 = tpu.reciprocal %53 {approx = true} : vector<8x1xf32> -> vector<8x1xf32>
    %55 = vector.broadcast %54 : vector<8x1xf32> to vector<8x8xf32>
    %56 = arith.mulf %51, %55 : vector<8x8xf32>
    %cst_30 = arith.constant dense<0.000000e+00> : vector<8x8xf32>
    %57 = tpu.matmul %56, %39, %cst_30 {dimension_numbers = #tpu.dot_dimension_numbers<[1], [0], [0], [1], [0, 0, 1, 1], [], []>} : vector<8x8xf32>, vector<8x8xf32>, vector<8x8xf32> -> vector<8x8xf32>
    %58 = vector.extract_strided_slice %11 {offsets = [0, 16], sizes = [8, 8], strides = [1, 1]} : vector<8x32xf32> to vector<8x8xf32>
    %59 = vector.extract_strided_slice %12 {offsets = [0, 16], sizes = [8, 8], strides = [1, 1]} : vector<8x32xf32> to vector<8x8xf32>
    %60 = vector.extract_strided_slice %13 {offsets = [0, 16], sizes = [8, 8], strides = [1, 1]} : vector<8x32xf32> to vector<8x8xf32>
    %cst_31 = arith.constant dense<0.000000e+00> : vector<8x8xf32>
    %61 = tpu.matmul %58, %59, %cst_31 {dimension_numbers = #tpu.dot_dimension_numbers<[1], [1], [0], [0], [0, 0, 1, 0], [], []>} : vector<8x8xf32>, vector<8x8xf32>, vector<8x8xf32> -> vector<8x8xf32>
    %cst_32 = arith.constant 0.353553385 : f32
    %62 = vector.broadcast %cst_32 : f32 to vector<8x8xf32>
    %63 = arith.mulf %61, %62 : vector<8x8xf32>
    %cst_33 = arith.constant 0.000000e+00 : f32
    %64 = vector.broadcast %cst_33 : f32 to vector<8x8xf32>
    %65 = arith.cmpf oeq, %15, %64 : vector<8x8xf32>
    %cst_34 = arith.constant -1.000000e+09 : f32
    %66 = vector.broadcast %cst_34 : f32 to vector<8x8xf32>
    %67 = arith.select %65, %66, %63 : vector<8x8xi1>, vector<8x8xf32>
    %cst_35 = arith.constant dense<0xFF800000> : vector<8xf32>
    %68 = vector.multi_reduction <maximumf>, %67, %cst_35 [1] : vector<8x8xf32> to vector<8xf32>
    %69 = vector.shape_cast %68 : vector<8xf32> to vector<8x1xf32>
    %70 = vector.broadcast %69 : vector<8x1xf32> to vector<8x8xf32>
    %71 = arith.subf %67, %70 : vector<8x8xf32>
    %72 = math.exp %71 : vector<8x8xf32>
    %cst_36 = arith.constant dense<0.000000e+00> : vector<8xf32>
    %73 = vector.multi_reduction <add>, %72, %cst_36 [1] : vector<8x8xf32> to vector<8xf32>
    %74 = vector.shape_cast %73 : vector<8xf32> to vector<8x1xf32>
    %75 = tpu.reciprocal %74 {approx = true} : vector<8x1xf32> -> vector<8x1xf32>
    %76 = vector.broadcast %75 : vector<8x1xf32> to vector<8x8xf32>
    %77 = arith.mulf %72, %76 : vector<8x8xf32>
    %cst_37 = arith.constant dense<0.000000e+00> : vector<8x8xf32>
    %78 = tpu.matmul %77, %60, %cst_37 {dimension_numbers = #tpu.dot_dimension_numbers<[1], [0], [0], [1], [0, 0, 1, 1], [], []>} : vector<8x8xf32>, vector<8x8xf32>, vector<8x8xf32> -> vector<8x8xf32>
    %79 = vector.extract_strided_slice %11 {offsets = [0, 24], sizes = [8, 8], strides = [1, 1]} : vector<8x32xf32> to vector<8x8xf32>
    %80 = vector.extract_strided_slice %12 {offsets = [0, 24], sizes = [8, 8], strides = [1, 1]} : vector<8x32xf32> to vector<8x8xf32>
    %81 = vector.extract_strided_slice %13 {offsets = [0, 24], sizes = [8, 8], strides = [1, 1]} : vector<8x32xf32> to vector<8x8xf32>
    %cst_38 = arith.constant dense<0.000000e+00> : vector<8x8xf32>
    %82 = tpu.matmul %79, %80, %cst_38 {dimension_numbers = #tpu.dot_dimension_numbers<[1], [1], [0], [0], [0, 0, 1, 0], [], []>} : vector<8x8xf32>, vector<8x8xf32>, vector<8x8xf32> -> vector<8x8xf32>
    %cst_39 = arith.constant 0.353553385 : f32
    %83 = vector.broadcast %cst_39 : f32 to vector<8x8xf32>
    %84 = arith.mulf %82, %83 : vector<8x8xf32>
    %cst_40 = arith.constant 0.000000e+00 : f32
    %85 = vector.broadcast %cst_40 : f32 to vector<8x8xf32>
    %86 = arith.cmpf oeq, %15, %85 : vector<8x8xf32>
    %cst_41 = arith.constant -1.000000e+09 : f32
    %87 = vector.broadcast %cst_41 : f32 to vector<8x8xf32>
    %88 = arith.select %86, %87, %84 : vector<8x8xi1>, vector<8x8xf32>
    %cst_42 = arith.constant dense<0xFF800000> : vector<8xf32>
    %89 = vector.multi_reduction <maximumf>, %88, %cst_42 [1] : vector<8x8xf32> to vector<8xf32>
    %90 = vector.shape_cast %89 : vector<8xf32> to vector<8x1xf32>
    %91 = vector.broadcast %90 : vector<8x1xf32> to vector<8x8xf32>
    %92 = arith.subf %88, %91 : vector<8x8xf32>
    %93 = math.exp %92 : vector<8x8xf32>
    %cst_43 = arith.constant dense<0.000000e+00> : vector<8xf32>
    %94 = vector.multi_reduction <add>, %93, %cst_43 [1] : vector<8x8xf32> to vector<8xf32>
    %95 = vector.shape_cast %94 : vector<8xf32> to vector<8x1xf32>
    %96 = tpu.reciprocal %95 {approx = true} : vector<8x1xf32> -> vector<8x1xf32>
    %97 = vector.broadcast %96 : vector<8x1xf32> to vector<8x8xf32>
    %98 = arith.mulf %93, %97 : vector<8x8xf32>
    %cst_44 = arith.constant dense<0.000000e+00> : vector<8x8xf32>
    %99 = tpu.matmul %98, %81, %cst_44 {dimension_numbers = #tpu.dot_dimension_numbers<[1], [0], [0], [1], [0, 0, 1, 1], [], []>} : vector<8x8xf32>, vector<8x8xf32>, vector<8x8xf32> -> vector<8x8xf32>
    %100 = tpu.concatenate %36, %57, %78, %99 in 1 : vector<8x8xf32>, vector<8x8xf32>, vector<8x8xf32>, vector<8x8xf32> -> vector<8x32xf32>
    %c0_45 = arith.constant 0 : index
    %c0_46 = arith.constant 0 : index
    %101 = vector.load %arg7[%c0_45, %c0_46] : memref<32x32xf32, #tpu.memory_space<vmem>>, vector<32x32xf32>
    %cst_47 = arith.constant dense<0.000000e+00> : vector<8x32xf32>
    %102 = tpu.matmul %100, %101, %cst_47 {dimension_numbers = #tpu.dot_dimension_numbers<[1], [0], [0], [1], [0, 0, 1, 1], [], []>} : vector<8x32xf32>, vector<32x32xf32>, vector<8x32xf32> -> vector<8x32xf32>
    %c0_48 = arith.constant 0 : index
    %c0_49 = arith.constant 0 : index
    %103 = vector.load %arg8[%c0_48, %c0_49] : memref<1x32xf32, #tpu.memory_space<vmem>>, vector<1x32xf32>
    %104 = vector.broadcast %103 : vector<1x32xf32> to vector<8x32xf32>
    %105 = arith.addf %102, %104 : vector<8x32xf32>
    %106 = arith.addf %105, %1 : vector<8x32xf32>
    %cst_50 = arith.constant dense<0.000000e+00> : vector<8xf32>
    %107 = vector.multi_reduction <add>, %106, %cst_50 [1] : vector<8x32xf32> to vector<8xf32>
    %108 = vector.shape_cast %107 : vector<8xf32> to vector<8x1xf32>
    %cst_51 = arith.constant 3.200000e+01 : f32
    %109 = vector.broadcast %cst_51 : f32 to vector<8x1xf32>
    %110 = arith.divf %108, %109 : vector<8x1xf32>
    %111 = vector.broadcast %110 : vector<8x1xf32> to vector<8x32xf32>
    %112 = arith.subf %106, %111 : vector<8x32xf32>
    %113 = arith.mulf %112, %112 : vector<8x32xf32>
    %cst_52 = arith.constant dense<0.000000e+00> : vector<8xf32>
    %114 = vector.multi_reduction <add>, %113, %cst_52 [1] : vector<8x32xf32> to vector<8xf32>
    %115 = vector.shape_cast %114 : vector<8xf32> to vector<8x1xf32>
    %cst_53 = arith.constant 3.200000e+01 : f32
    %116 = vector.broadcast %cst_53 : f32 to vector<8x1xf32>
    %117 = arith.divf %115, %116 : vector<8x1xf32>
    %118 = vector.broadcast %110 : vector<8x1xf32> to vector<8x32xf32>
    %119 = arith.subf %106, %118 : vector<8x32xf32>
    %cst_54 = arith.constant 9.99999974E-6 : f32
    %120 = vector.broadcast %cst_54 : f32 to vector<8x1xf32>
    %121 = arith.addf %117, %120 : vector<8x1xf32>
    %122 = math.rsqrt %121 : vector<8x1xf32>
    %123 = vector.broadcast %122 : vector<8x1xf32> to vector<8x32xf32>
    %124 = arith.mulf %119, %123 : vector<8x32xf32>
    %125 = vector.broadcast %4 : vector<1x32xf32> to vector<8x32xf32>
    %126 = arith.mulf %124, %125 : vector<8x32xf32>
    %127 = vector.broadcast %5 : vector<1x32xf32> to vector<8x32xf32>
    %128 = arith.addf %126, %127 : vector<8x32xf32>
    %c0_55 = arith.constant 0 : index
    %c0_56 = arith.constant 0 : index
    %129 = vector.load %arg9[%c0_55, %c0_56] : memref<32x32xf32, #tpu.memory_space<vmem>>, vector<32x32xf32>
    %cst_57 = arith.constant dense<0.000000e+00> : vector<8x32xf32>
    %130 = tpu.matmul %128, %129, %cst_57 {dimension_numbers = #tpu.dot_dimension_numbers<[1], [0], [0], [1], [0, 0, 1, 1], [], []>} : vector<8x32xf32>, vector<32x32xf32>, vector<8x32xf32> -> vector<8x32xf32>
    %c0_58 = arith.constant 0 : index
    %c0_59 = arith.constant 0 : index
    %131 = vector.load %arg10[%c0_58, %c0_59] : memref<1x32xf32, #tpu.memory_space<vmem>>, vector<1x32xf32>
    %132 = vector.broadcast %131 : vector<1x32xf32> to vector<8x32xf32>
    %133 = arith.addf %130, %132 : vector<8x32xf32>
    %c0_60 = arith.constant 0 : index
    %c0_61 = arith.constant 0 : index
    %134 = vector.load %arg11[%c0_60, %c0_61] : memref<32x64xf32, #tpu.memory_space<vmem>>, vector<32x64xf32>
    %cst_62 = arith.constant dense<0.000000e+00> : vector<8x64xf32>
    %135 = tpu.matmul %3, %134, %cst_62 {dimension_numbers = #tpu.dot_dimension_numbers<[1], [0], [0], [1], [0, 0, 1, 1], [], []>} : vector<8x32xf32>, vector<32x64xf32>, vector<8x64xf32> -> vector<8x64xf32>
    %c0_63 = arith.constant 0 : index
    %c0_64 = arith.constant 0 : index
    %136 = vector.load %arg12[%c0_63, %c0_64] : memref<1x64xf32, #tpu.memory_space<vmem>>, vector<1x64xf32>
    %137 = vector.broadcast %136 : vector<1x64xf32> to vector<8x64xf32>
    %138 = arith.addf %135, %137 : vector<8x64xf32>
    %139 = vector.extract_strided_slice %138 {offsets = [0, 0], sizes = [8, 32], strides = [1, 1]} : vector<8x64xf32> to vector<8x32xf32>
    %140 = vector.extract_strided_slice %138 {offsets = [0, 32], sizes = [8, 32], strides = [1, 1]} : vector<8x64xf32> to vector<8x32xf32>
    %c0_65 = arith.constant 0 : index
    %c0_66 = arith.constant 0 : index
    %c0_67 = arith.constant 0 : index
    %c0_68 = arith.constant 0 : index
    %141 = vector.load %arg4[%c0_65, %c0_66, %c0_67, %c0_68] : memref<1x1x8x8xf32, #tpu.memory_space<vmem>>, vector<1x1x8x8xf32>
    %142 = vector.shape_cast %141 : vector<1x1x8x8xf32> to vector<8x8xf32>
    %143 = vector.extract_strided_slice %133 {offsets = [0, 0], sizes = [8, 8], strides = [1, 1]} : vector<8x32xf32> to vector<8x8xf32>
    %144 = vector.extract_strided_slice %139 {offsets = [0, 0], sizes = [8, 8], strides = [1, 1]} : vector<8x32xf32> to vector<8x8xf32>
    %145 = vector.extract_strided_slice %140 {offsets = [0, 0], sizes = [8, 8], strides = [1, 1]} : vector<8x32xf32> to vector<8x8xf32>
    %cst_69 = arith.constant dense<0.000000e+00> : vector<8x8xf32>
    %146 = tpu.matmul %143, %144, %cst_69 {dimension_numbers = #tpu.dot_dimension_numbers<[1], [1], [0], [0], [0, 0, 1, 0], [], []>} : vector<8x8xf32>, vector<8x8xf32>, vector<8x8xf32> -> vector<8x8xf32>
    %cst_70 = arith.constant 0.353553385 : f32
    %147 = vector.broadcast %cst_70 : f32 to vector<8x8xf32>
    %148 = arith.mulf %146, %147 : vector<8x8xf32>
    %cst_71 = arith.constant 0.000000e+00 : f32
    %149 = vector.broadcast %cst_71 : f32 to vector<8x8xf32>
    %150 = arith.cmpf oeq, %142, %149 : vector<8x8xf32>
    %cst_72 = arith.constant -1.000000e+09 : f32
    %151 = vector.broadcast %cst_72 : f32 to vector<8x8xf32>
    %152 = arith.select %150, %151, %148 : vector<8x8xi1>, vector<8x8xf32>
    %cst_73 = arith.constant dense<0xFF800000> : vector<8xf32>
    %153 = vector.multi_reduction <maximumf>, %152, %cst_73 [1] : vector<8x8xf32> to vector<8xf32>
    %154 = vector.shape_cast %153 : vector<8xf32> to vector<8x1xf32>
    %155 = vector.broadcast %154 : vector<8x1xf32> to vector<8x8xf32>
    %156 = arith.subf %152, %155 : vector<8x8xf32>
    %157 = math.exp %156 : vector<8x8xf32>
    %cst_74 = arith.constant dense<0.000000e+00> : vector<8xf32>
    %158 = vector.multi_reduction <add>, %157, %cst_74 [1] : vector<8x8xf32> to vector<8xf32>
    %159 = vector.shape_cast %158 : vector<8xf32> to vector<8x1xf32>
    %160 = tpu.reciprocal %159 {approx = true} : vector<8x1xf32> -> vector<8x1xf32>
    %161 = vector.broadcast %160 : vector<8x1xf32> to vector<8x8xf32>
    %162 = arith.mulf %157, %161 : vector<8x8xf32>
    %cst_75 = arith.constant dense<0.000000e+00> : vector<8x8xf32>
    %163 = tpu.matmul %162, %145, %cst_75 {dimension_numbers = #tpu.dot_dimension_numbers<[1], [0], [0], [1], [0, 0, 1, 1], [], []>} : vector<8x8xf32>, vector<8x8xf32>, vector<8x8xf32> -> vector<8x8xf32>
    %164 = vector.extract_strided_slice %133 {offsets = [0, 8], sizes = [8, 8], strides = [1, 1]} : vector<8x32xf32> to vector<8x8xf32>
    %165 = vector.extract_strided_slice %139 {offsets = [0, 8], sizes = [8, 8], strides = [1, 1]} : vector<8x32xf32> to vector<8x8xf32>
    %166 = vector.extract_strided_slice %140 {offsets = [0, 8], sizes = [8, 8], strides = [1, 1]} : vector<8x32xf32> to vector<8x8xf32>
    %cst_76 = arith.constant dense<0.000000e+00> : vector<8x8xf32>
    %167 = tpu.matmul %164, %165, %cst_76 {dimension_numbers = #tpu.dot_dimension_numbers<[1], [1], [0], [0], [0, 0, 1, 0], [], []>} : vector<8x8xf32>, vector<8x8xf32>, vector<8x8xf32> -> vector<8x8xf32>
    %cst_77 = arith.constant 0.353553385 : f32
    %168 = vector.broadcast %cst_77 : f32 to vector<8x8xf32>
    %169 = arith.mulf %167, %168 : vector<8x8xf32>
    %cst_78 = arith.constant 0.000000e+00 : f32
    %170 = vector.broadcast %cst_78 : f32 to vector<8x8xf32>
    %171 = arith.cmpf oeq, %142, %170 : vector<8x8xf32>
    %cst_79 = arith.constant -1.000000e+09 : f32
    %172 = vector.broadcast %cst_79 : f32 to vector<8x8xf32>
    %173 = arith.select %171, %172, %169 : vector<8x8xi1>, vector<8x8xf32>
    %cst_80 = arith.constant dense<0xFF800000> : vector<8xf32>
    %174 = vector.multi_reduction <maximumf>, %173, %cst_80 [1] : vector<8x8xf32> to vector<8xf32>
    %175 = vector.shape_cast %174 : vector<8xf32> to vector<8x1xf32>
    %176 = vector.broadcast %175 : vector<8x1xf32> to vector<8x8xf32>
    %177 = arith.subf %173, %176 : vector<8x8xf32>
    %178 = math.exp %177 : vector<8x8xf32>
    %cst_81 = arith.constant dense<0.000000e+00> : vector<8xf32>
    %179 = vector.multi_reduction <add>, %178, %cst_81 [1] : vector<8x8xf32> to vector<8xf32>
    %180 = vector.shape_cast %179 : vector<8xf32> to vector<8x1xf32>
    %181 = tpu.reciprocal %180 {approx = true} : vector<8x1xf32> -> vector<8x1xf32>
    %182 = vector.broadcast %181 : vector<8x1xf32> to vector<8x8xf32>
    %183 = arith.mulf %178, %182 : vector<8x8xf32>
    %cst_82 = arith.constant dense<0.000000e+00> : vector<8x8xf32>
    %184 = tpu.matmul %183, %166, %cst_82 {dimension_numbers = #tpu.dot_dimension_numbers<[1], [0], [0], [1], [0, 0, 1, 1], [], []>} : vector<8x8xf32>, vector<8x8xf32>, vector<8x8xf32> -> vector<8x8xf32>
    %185 = vector.extract_strided_slice %133 {offsets = [0, 16], sizes = [8, 8], strides = [1, 1]} : vector<8x32xf32> to vector<8x8xf32>
    %186 = vector.extract_strided_slice %139 {offsets = [0, 16], sizes = [8, 8], strides = [1, 1]} : vector<8x32xf32> to vector<8x8xf32>
    %187 = vector.extract_strided_slice %140 {offsets = [0, 16], sizes = [8, 8], strides = [1, 1]} : vector<8x32xf32> to vector<8x8xf32>
    %cst_83 = arith.constant dense<0.000000e+00> : vector<8x8xf32>
    %188 = tpu.matmul %185, %186, %cst_83 {dimension_numbers = #tpu.dot_dimension_numbers<[1], [1], [0], [0], [0, 0, 1, 0], [], []>} : vector<8x8xf32>, vector<8x8xf32>, vector<8x8xf32> -> vector<8x8xf32>
    %cst_84 = arith.constant 0.353553385 : f32
    %189 = vector.broadcast %cst_84 : f32 to vector<8x8xf32>
    %190 = arith.mulf %188, %189 : vector<8x8xf32>
    %cst_85 = arith.constant 0.000000e+00 : f32
    %191 = vector.broadcast %cst_85 : f32 to vector<8x8xf32>
    %192 = arith.cmpf oeq, %142, %191 : vector<8x8xf32>
    %cst_86 = arith.constant -1.000000e+09 : f32
    %193 = vector.broadcast %cst_86 : f32 to vector<8x8xf32>
    %194 = arith.select %192, %193, %190 : vector<8x8xi1>, vector<8x8xf32>
    %cst_87 = arith.constant dense<0xFF800000> : vector<8xf32>
    %195 = vector.multi_reduction <maximumf>, %194, %cst_87 [1] : vector<8x8xf32> to vector<8xf32>
    %196 = vector.shape_cast %195 : vector<8xf32> to vector<8x1xf32>
    %197 = vector.broadcast %196 : vector<8x1xf32> to vector<8x8xf32>
    %198 = arith.subf %194, %197 : vector<8x8xf32>
    %199 = math.exp %198 : vector<8x8xf32>
    %cst_88 = arith.constant dense<0.000000e+00> : vector<8xf32>
    %200 = vector.multi_reduction <add>, %199, %cst_88 [1] : vector<8x8xf32> to vector<8xf32>
    %201 = vector.shape_cast %200 : vector<8xf32> to vector<8x1xf32>
    %202 = tpu.reciprocal %201 {approx = true} : vector<8x1xf32> -> vector<8x1xf32>
    %203 = vector.broadcast %202 : vector<8x1xf32> to vector<8x8xf32>
    %204 = arith.mulf %199, %203 : vector<8x8xf32>
    %cst_89 = arith.constant dense<0.000000e+00> : vector<8x8xf32>
    %205 = tpu.matmul %204, %187, %cst_89 {dimension_numbers = #tpu.dot_dimension_numbers<[1], [0], [0], [1], [0, 0, 1, 1], [], []>} : vector<8x8xf32>, vector<8x8xf32>, vector<8x8xf32> -> vector<8x8xf32>
    %206 = vector.extract_strided_slice %133 {offsets = [0, 24], sizes = [8, 8], strides = [1, 1]} : vector<8x32xf32> to vector<8x8xf32>
    %207 = vector.extract_strided_slice %139 {offsets = [0, 24], sizes = [8, 8], strides = [1, 1]} : vector<8x32xf32> to vector<8x8xf32>
    %208 = vector.extract_strided_slice %140 {offsets = [0, 24], sizes = [8, 8], strides = [1, 1]} : vector<8x32xf32> to vector<8x8xf32>
    %cst_90 = arith.constant dense<0.000000e+00> : vector<8x8xf32>
    %209 = tpu.matmul %206, %207, %cst_90 {dimension_numbers = #tpu.dot_dimension_numbers<[1], [1], [0], [0], [0, 0, 1, 0], [], []>} : vector<8x8xf32>, vector<8x8xf32>, vector<8x8xf32> -> vector<8x8xf32>
    %cst_91 = arith.constant 0.353553385 : f32
    %210 = vector.broadcast %cst_91 : f32 to vector<8x8xf32>
    %211 = arith.mulf %209, %210 : vector<8x8xf32>
    %cst_92 = arith.constant 0.000000e+00 : f32
    %212 = vector.broadcast %cst_92 : f32 to vector<8x8xf32>
    %213 = arith.cmpf oeq, %142, %212 : vector<8x8xf32>
    %cst_93 = arith.constant -1.000000e+09 : f32
    %214 = vector.broadcast %cst_93 : f32 to vector<8x8xf32>
    %215 = arith.select %213, %214, %211 : vector<8x8xi1>, vector<8x8xf32>
    %cst_94 = arith.constant dense<0xFF800000> : vector<8xf32>
    %216 = vector.multi_reduction <maximumf>, %215, %cst_94 [1] : vector<8x8xf32> to vector<8xf32>
    %217 = vector.shape_cast %216 : vector<8xf32> to vector<8x1xf32>
    %218 = vector.broadcast %217 : vector<8x1xf32> to vector<8x8xf32>
    %219 = arith.subf %215, %218 : vector<8x8xf32>
    %220 = math.exp %219 : vector<8x8xf32>
    %cst_95 = arith.constant dense<0.000000e+00> : vector<8xf32>
    %221 = vector.multi_reduction <add>, %220, %cst_95 [1] : vector<8x8xf32> to vector<8xf32>
    %222 = vector.shape_cast %221 : vector<8xf32> to vector<8x1xf32>
    %223 = tpu.reciprocal %222 {approx = true} : vector<8x1xf32> -> vector<8x1xf32>
    %224 = vector.broadcast %223 : vector<8x1xf32> to vector<8x8xf32>
    %225 = arith.mulf %220, %224 : vector<8x8xf32>
    %cst_96 = arith.constant dense<0.000000e+00> : vector<8x8xf32>
    %226 = tpu.matmul %225, %208, %cst_96 {dimension_numbers = #tpu.dot_dimension_numbers<[1], [0], [0], [1], [0, 0, 1, 1], [], []>} : vector<8x8xf32>, vector<8x8xf32>, vector<8x8xf32> -> vector<8x8xf32>
    %227 = tpu.concatenate %163, %184, %205, %226 in 1 : vector<8x8xf32>, vector<8x8xf32>, vector<8x8xf32>, vector<8x8xf32> -> vector<8x32xf32>
    %c0_97 = arith.constant 0 : index
    %c0_98 = arith.constant 0 : index
    %228 = vector.load %arg13[%c0_97, %c0_98] : memref<32x32xf32, #tpu.memory_space<vmem>>, vector<32x32xf32>
    %cst_99 = arith.constant dense<0.000000e+00> : vector<8x32xf32>
    %229 = tpu.matmul %227, %228, %cst_99 {dimension_numbers = #tpu.dot_dimension_numbers<[1], [0], [0], [1], [0, 0, 1, 1], [], []>} : vector<8x32xf32>, vector<32x32xf32>, vector<8x32xf32> -> vector<8x32xf32>
    %c0_100 = arith.constant 0 : index
    %c0_101 = arith.constant 0 : index
    %230 = vector.load %arg14[%c0_100, %c0_101] : memref<1x32xf32, #tpu.memory_space<vmem>>, vector<1x32xf32>
    %231 = vector.broadcast %230 : vector<1x32xf32> to vector<8x32xf32>
    %232 = arith.addf %229, %231 : vector<8x32xf32>
    %233 = arith.addf %232, %128 : vector<8x32xf32>
    %cst_102 = arith.constant dense<0.000000e+00> : vector<8xf32>
    %234 = vector.multi_reduction <add>, %233, %cst_102 [1] : vector<8x32xf32> to vector<8xf32>
    %235 = vector.shape_cast %234 : vector<8xf32> to vector<8x1xf32>
    %cst_103 = arith.constant 3.200000e+01 : f32
    %236 = vector.broadcast %cst_103 : f32 to vector<8x1xf32>
    %237 = arith.divf %235, %236 : vector<8x1xf32>
    %238 = vector.broadcast %237 : vector<8x1xf32> to vector<8x32xf32>
    %239 = arith.subf %233, %238 : vector<8x32xf32>
    %240 = arith.mulf %239, %239 : vector<8x32xf32>
    %cst_104 = arith.constant dense<0.000000e+00> : vector<8xf32>
    %241 = vector.multi_reduction <add>, %240, %cst_104 [1] : vector<8x32xf32> to vector<8xf32>
    %242 = vector.shape_cast %241 : vector<8xf32> to vector<8x1xf32>
    %cst_105 = arith.constant 3.200000e+01 : f32
    %243 = vector.broadcast %cst_105 : f32 to vector<8x1xf32>
    %244 = arith.divf %242, %243 : vector<8x1xf32>
    %245 = vector.broadcast %237 : vector<8x1xf32> to vector<8x32xf32>
    %246 = arith.subf %233, %245 : vector<8x32xf32>
    %cst_106 = arith.constant 9.99999974E-6 : f32
    %247 = vector.broadcast %cst_106 : f32 to vector<8x1xf32>
    %248 = arith.addf %244, %247 : vector<8x1xf32>
    %249 = math.rsqrt %248 : vector<8x1xf32>
    %250 = vector.broadcast %249 : vector<8x1xf32> to vector<8x32xf32>
    %251 = arith.mulf %246, %250 : vector<8x32xf32>
    %252 = vector.broadcast %4 : vector<1x32xf32> to vector<8x32xf32>
    %253 = arith.mulf %251, %252 : vector<8x32xf32>
    %254 = vector.broadcast %5 : vector<1x32xf32> to vector<8x32xf32>
    %255 = arith.addf %253, %254 : vector<8x32xf32>
    %c0_107 = arith.constant 0 : index
    %c0_108 = arith.constant 0 : index
    %256 = vector.load %arg15[%c0_107, %c0_108] : memref<32x64xf32, #tpu.memory_space<vmem>>, vector<32x64xf32>
    %cst_109 = arith.constant dense<0.000000e+00> : vector<8x64xf32>
    %257 = tpu.matmul %255, %256, %cst_109 {dimension_numbers = #tpu.dot_dimension_numbers<[1], [0], [0], [1], [0, 0, 1, 1], [], []>} : vector<8x32xf32>, vector<32x64xf32>, vector<8x64xf32> -> vector<8x64xf32>
    %c0_110 = arith.constant 0 : index
    %c0_111 = arith.constant 0 : index
    %258 = vector.load %arg16[%c0_110, %c0_111] : memref<1x64xf32, #tpu.memory_space<vmem>>, vector<1x64xf32>
    %259 = vector.broadcast %258 : vector<1x64xf32> to vector<8x64xf32>
    %260 = arith.addf %257, %259 : vector<8x64xf32>
    %cst_112 = arith.constant 0.000000e+00 : f32
    %261 = vector.broadcast %cst_112 : f32 to vector<8x64xf32>
    %262 = arith.maximumf %260, %261 : vector<8x64xf32>
    %c0_113 = arith.constant 0 : index
    %c0_114 = arith.constant 0 : index
    %263 = vector.load %arg17[%c0_113, %c0_114] : memref<64x32xf32, #tpu.memory_space<vmem>>, vector<64x32xf32>
    %cst_115 = arith.constant dense<0.000000e+00> : vector<8x32xf32>
    %264 = tpu.matmul %262, %263, %cst_115 {dimension_numbers = #tpu.dot_dimension_numbers<[1], [0], [0], [1], [0, 0, 1, 1], [], []>} : vector<8x64xf32>, vector<64x32xf32>, vector<8x32xf32> -> vector<8x32xf32>
    %c0_116 = arith.constant 0 : index
    %c0_117 = arith.constant 0 : index
    %265 = vector.load %arg18[%c0_116, %c0_117] : memref<1x32xf32, #tpu.memory_space<vmem>>, vector<1x32xf32>
    %266 = vector.broadcast %265 : vector<1x32xf32> to vector<8x32xf32>
    %267 = arith.addf %264, %266 : vector<8x32xf32>
    %268 = arith.addf %267, %255 : vector<8x32xf32>
    %cst_118 = arith.constant dense<0.000000e+00> : vector<8xf32>
    %269 = vector.multi_reduction <add>, %268, %cst_118 [1] : vector<8x32xf32> to vector<8xf32>
    %270 = vector.shape_cast %269 : vector<8xf32> to vector<8x1xf32>
    %cst_119 = arith.constant 3.200000e+01 : f32
    %271 = vector.broadcast %cst_119 : f32 to vector<8x1xf32>
    %272 = arith.divf %270, %271 : vector<8x1xf32>
    %273 = vector.broadcast %272 : vector<8x1xf32> to vector<8x32xf32>
    %274 = arith.subf %268, %273 : vector<8x32xf32>
    %275 = arith.mulf %274, %274 : vector<8x32xf32>
    %cst_120 = arith.constant dense<0.000000e+00> : vector<8xf32>
    %276 = vector.multi_reduction <add>, %275, %cst_120 [1] : vector<8x32xf32> to vector<8xf32>
    %277 = vector.shape_cast %276 : vector<8xf32> to vector<8x1xf32>
    %cst_121 = arith.constant 3.200000e+01 : f32
    %278 = vector.broadcast %cst_121 : f32 to vector<8x1xf32>
    %279 = arith.divf %277, %278 : vector<8x1xf32>
    %280 = vector.broadcast %272 : vector<8x1xf32> to vector<8x32xf32>
    %281 = arith.subf %268, %280 : vector<8x32xf32>
    %cst_122 = arith.constant 9.99999974E-6 : f32
    %282 = vector.broadcast %cst_122 : f32 to vector<8x1xf32>
    %283 = arith.addf %279, %282 : vector<8x1xf32>
    %284 = math.rsqrt %283 : vector<8x1xf32>
    %285 = vector.broadcast %284 : vector<8x1xf32> to vector<8x32xf32>
    %286 = arith.mulf %281, %285 : vector<8x32xf32>
    %287 = vector.broadcast %4 : vector<1x32xf32> to vector<8x32xf32>
    %288 = arith.mulf %286, %287 : vector<8x32xf32>
    %289 = vector.broadcast %5 : vector<1x32xf32> to vector<8x32xf32>
    %290 = arith.addf %288, %289 : vector<8x32xf32>
    %c0_123 = arith.constant 0 : index
    %c0_124 = arith.constant 0 : index
    %c0_125 = arith.constant 0 : index
    %291 = vector.load %arg21[%c0_123, %c0_124, %c0_125] : memref<1x8x32xf32, #tpu.memory_space<vmem>>, vector<1x8x32xf32>
    %292 = vector.shape_cast %291 : vector<1x8x32xf32> to vector<8x32xf32>
    %293 = vector.shape_cast %290 : vector<8x32xf32> to vector<1x8x32xf32>
    tpu.vector_store %arg21[%c0_123, %c0_124, %c0_125], %293 {strides = array<i32>} : memref<1x8x32xf32, #tpu.memory_space<vmem>>, vector<1x8x32xf32>,
    return
  }
  func.func @transform_0(%arg0: i32) -> (i32, i32, i32) {
    %c0_i32 = arith.constant 0 : i32
    %c0_i32_0 = arith.constant 0 : i32
    %c0_i32_1 = arith.constant 0 : i32
    return %arg0, %c0_i32, %c0_i32_0 : i32, i32, i32
  }
  func.func @transform_1(%arg0: i32) -> (i32, i32, i32) {
    %c0_i32 = arith.constant 0 : i32
    %c0_i32_0 = arith.constant 0 : i32
    %c0_i32_1 = arith.constant 0 : i32
    return %arg0, %c0_i32, %c0_i32_0 : i32, i32, i32
  }
  func.func @transform_2(%arg0: i32) -> (i32, i32, i32, i32) {
    %c0_i32 = arith.constant 0 : i32
    %c0_i32_0 = arith.constant 0 : i32
    %c0_i32_1 = arith.constant 0 : i32
    %c0_i32_2 = arith.constant 0 : i32
    return %arg0, %c0_i32, %c0_i32_0, %c0_i32_1 : i32, i32, i32, i32
  }
  func.func @transform_3(%arg0: i32) -> (i32, i32, i32, i32) {
    %c0_i32 = arith.constant 0 : i32
    %c0_i32_0 = arith.constant 0 : i32
    %c0_i32_1 = arith.constant 0 : i32
    %c0_i32_2 = arith.constant 0 : i32
    return %arg0, %c0_i32, %c0_i32_0, %c0_i32_1 : i32, i32, i32, i32
  }
  func.func @transform_4(%arg0: i32) -> (i32, i32) {
    %c0_i32 = arith.constant 0 : i32
    %c0_i32_0 = arith.constant 0 : i32
    %c0_i32_1 = arith.constant 0 : i32
    return %c0_i32, %c0_i32_0 : i32, i32
  }
  func.func @transform_5(%arg0: i32) -> (i32, i32) {
    %c0_i32 = arith.constant 0 : i32
    %c0_i32_0 = arith.constant 0 : i32
    %c0_i32_1 = arith.constant 0 : i32
    return %c0_i32, %c0_i32_0 : i32, i32
  }
  func.func @transform_6(%arg0: i32) -> (i32, i32) {
    %c0_i32 = arith.constant 0 : i32
    %c0_i32_0 = arith.constant 0 : i32
    %c0_i32_1 = arith.constant 0 : i32
    return %c0_i32, %c0_i32_0 : i32, i32
  }
  func.func @transform_7(%arg0: i32) -> (i32, i32) {
    %c0_i32 = arith.constant 0 : i32
    %c0_i32_0 = arith.constant 0 : i32
    %c0_i32_1 = arith.constant 0 : i32
    return %c0_i32, %c0_i32_0 : i32, i32
  }
  func.func @transform_8(%arg0: i32) -> (i32, i32) {
    %c0_i32 = arith.constant 0 : i32
    %c0_i32_0 = arith.constant 0 : i32
    %c0_i32_1 = arith.constant 0 : i32
    return %c0_i32, %c0_i32_0 : i32, i32
  }
  func.func @transform_9(%arg0: i32) -> (i32, i32) {
    %c0_i32 = arith.constant 0 : i32
    %c0_i32_0 = arith.constant 0 : i32
    %c0_i32_1 = arith.constant 0 : i32
    return %c0_i32, %c0_i32_0 : i32, i32
  }
  func.func @transform_10(%arg0: i32) -> (i32, i32) {
    %c0_i32 = arith.constant 0 : i32
    %c0_i32_0 = arith.constant 0 : i32
    %c0_i32_1 = arith.constant 0 : i32
    return %c0_i32, %c0_i32_0 : i32, i32
  }
  func.func @transform_11(%arg0: i32) -> (i32, i32) {
    %c0_i32 = arith.constant 0 : i32
    %c0_i32_0 = arith.constant 0 : i32
    %c0_i32_1 = arith.constant 0 : i32
    return %c0_i32, %c0_i32_0 : i32, i32
  }
  func.func @transform_12(%arg0: i32) -> (i32, i32) {
    %c0_i32 = arith.constant 0 : i32
    %c0_i32_0 = arith.constant 0 : i32
    %c0_i32_1 = arith.constant 0 : i32
    return %c0_i32, %c0_i32_0 : i32, i32
  }
  func.func @transform_13(%arg0: i32) -> (i32, i32) {
    %c0_i32 = arith.constant 0 : i32
    %c0_i32_0 = arith.constant 0 : i32
    %c0_i32_1 = arith.constant 0 : i32
    return %c0_i32, %c0_i32_0 : i32, i32
  }
  func.func @transform_14(%arg0: i32) -> (i32, i32) {
    %c0_i32 = arith.constant 0 : i32
    %c0_i32_0 = arith.constant 0 : i32
    %c0_i32_1 = arith.constant 0 : i32
    return %c0_i32, %c0_i32_0 : i32, i32
  }
  func.func @transform_15(%arg0: i32) -> (i32, i32) {
    %c0_i32 = arith.constant 0 : i32
    %c0_i32_0 = arith.constant 0 : i32
    %c0_i32_1 = arith.constant 0 : i32
    return %c0_i32, %c0_i32_0 : i32, i32
  }
  func.func @transform_16(%arg0: i32) -> (i32, i32) {
    %c0_i32 = arith.constant 0 : i32
    %c0_i32_0 = arith.constant 0 : i32
    %c0_i32_1 = arith.constant 0 : i32
    return %c0_i32, %c0_i32_0 : i32, i32
  }
  func.func @transform_17(%arg0: i32) -> (i32, i32) {
    %c0_i32 = arith.constant 0 : i32
    %c0_i32_0 = arith.constant 0 : i32
    %c0_i32_1 = arith.constant 0 : i32
    return %c0_i32, %c0_i32_0 : i32, i32
  }
  func.func @transform_18(%arg0: i32) -> (i32, i32) {
    %c0_i32 = arith.constant 0 : i32
    %c0_i32_0 = arith.constant 0 : i32
    %c0_i32_1 = arith.constant 0 : i32
    return %c0_i32, %c0_i32_0 : i32, i32
  }
  func.func @transform_19(%arg0: i32) -> (i32, i32) {
    %c0_i32 = arith.constant 0 : i32
    %c0_i32_0 = arith.constant 0 : i32
    %c0_i32_1 = arith.constant 0 : i32
    return %c0_i32, %c0_i32_0 : i32, i32
  }
  func.func @transform_20(%arg0: i32) -> (i32, i32, i32) {
    %c0_i32 = arith.constant 0 : i32
    %c0_i32_0 = arith.constant 0 : i32
    %c0_i32_1 = arith.constant 0 : i32
    return %arg0, %c0_i32, %c0_i32_0 : i32, i32, i32
  }
}

</mosaic_0001>

<bundles_post_ra>
// kernel: tpu_custom_call.1
= control target key start
LH: loop header
LB: loop body
LE: loop exit
PB: predicated region body
PF: predicated region fallthrough
CT: control target
= control target key end

     0   :  { %s4599_s0 = inlined_call_operand.hbm [shape: f32[2,8,32], index: 0, kind: input, shape index: {}]   ;;  %s4600_s1 = inlined_call_operand.hbm [shape: f32[2,8,32], index: 1, kind: input, shape index: {}]   ;;  %s4601_s2 = inlined_call_operand.hbm [shape: f32[2,1,8,8], index: 2, kind: input, shape index: {}]   ;;  %s4602_s3 = inlined_call_operand.hbm [shape: f32[2,1,8,8], index: 3, kind: input, shape index: {}]   ;;  %s4603_s4 = inlined_call_operand.vmem [shape: f32[32,96], index: 4, kind: input, shape index: {}]   ;;  %s4604_s5 = inlined_call_operand.vmem [shape: f32[1,96], index: 5, kind: input, shape index: {}]   ;;  %s4605_s6 = inlined_call_operand.vmem [shape: f32[32,32], index: 6, kind: input, shape index: {}]   ;;  %s4606_s7 = inlined_call_operand.vmem [shape: f32[1,32], index: 7, kind: input, shape index: {}]   ;;  %s4607_s8 = inlined_call_operand.vmem [shape: f32[32,32], index: 8, kind: input, shape index: {}]   ;;  %s4608_s9 = inlined_call_operand.vmem [shape: f32[1,32], index: 9, kind: input, shape index: {}]   ;;  %s4609_s10 = inlined_call_operand.hbm [shape: f32[32,64], index: 10, kind: input, shape index: {}]   ;;  %s4610_s11 = inlined_call_operand.vmem [shape: f32[1,64], index: 11, kind: input, shape index: {}]   ;;  %s4611_s12 = inlined_call_operand.hbm [shape: f32[32,32], index: 12, kind: input, shape index: {}]   ;;  %s4612_s13 = inlined_call_operand.vmem [shape: f32[1,32], index: 13, kind: input, shape index: {}]   ;;  %s4613_s14 = inlined_call_operand.hbm [shape: f32[32,64], index: 14, kind: input, shape index: {}]   ;;  %s4614_s15 = inlined_call_operand.vmem [shape: f32[1,64], index: 15, kind: input, shape index: {}]   ;;  %s4615_s16 = inlined_call_operand.vmem [shape: f32[64,32], index: 16, kind: input, shape index: {}]   ;;  %s4616_s17 = inlined_call_operand.vmem [shape: f32[1,32], index: 17, kind: input, shape index: {}]   ;;  %s4617_s18 = inlined_call_operand.vmem [shape: f32[1,32], index: 18, kind: input, shape index: {}]   ;;  %s4618_s19 = inlined_call_operand.vmem [shape: f32[1,32], index: 19, kind: input, shape index: {}]   ;;  %s4619_s20 = inlined_call_operand.hbm [shape: f32[2,8,32], index: 20, kind: output, shape index: {}]  }
   0x1   :  { %4652 = sst [smem:[#allocation26_spill]] %s4599_s0 }
   0x2   :  { %4653 = sst [smem:[#allocation27_spill]] %s4600_s1 }
   0x3   :  { %4654 = sst [smem:[#allocation28_spill]] %s4601_s2 }
   0x4   :  { %4655 = sst [smem:[#allocation29_spill]] %s4602_s3 }
   0x5   :  { %4656 = sst [smem:[#allocation30_spill]] %s4603_s4 }
   0x6   :  { %4657 = sst [smem:[#allocation31_spill]] %s4608_s9 }
   0x7   :  { %4658 = sst [smem:[#allocation32_spill]] %s4609_s10 }
   0x8   :  { %4659 = sst [smem:[#allocation33_spill]] %s4610_s11 }
   0x9   :  { %4660 = sst [smem:[#allocation34_spill]] %s4611_s12 }
   0xa   :  { %4661 = sst [smem:[#allocation35_spill]] %s4612_s13 }
   0xb   :  { %4662 = sst [smem:[#allocation36_spill]] %s4614_s15 }
   0xc   :  { %4663 = sst [smem:[#allocation37_spill]] %s4615_s16 }
   0xd   :  { %4664 = sst [smem:[#allocation38_spill]] %s4616_s17 }
   0xe   :  { %4665 = sst [smem:[#allocation39_spill]] %s4619_s20 }
   0xf   :  { %25 = vsyncpa [#allocation3], 0 }
  0x10   :  { %27 = vsyncpa [#allocation3 + $0x1], 0 }
  0x11   :  { %28 = vsyncpa [#allocation6], 0 }
  0x12   :  { %30 = vsyncpa [#allocation6 + $0x1], 0 }
  0x13   :  { %31 = vsyncpa [#allocation9], 0 }
  0x14   :  { %33 = vsyncpa [#allocation9 + $0x1], 0 }
  0x15   :  { %34 = vsyncpa [#allocation12], 0 }
  0x16   :  { %35 = vsyncpa [#allocation4], 0 }
  0x17   :  { %37 = vsyncpa [#allocation4 + $0x1], 0  ;;  %s3925_s1 = smov 0   ;;  %s3927_s22 = smov 0  }
  0x18   :  { %s3929_s23 = smov 0   ;;  %s3931_s24 = smov 0  }
  0x19 LB: > { %4666 = sst [smem:[#allocation21_spill]] %s3779_s1  ;;  %s3946_s2 = sadd.s32 4294967295, %s3791_s24   ;;  %s3791_s24 = sphi %s3931_s24, %s4720_s24   ;;  %s3787_s23 = sphi %s3929_s23, %s4724_s23   ;;  %s3783_s22 = sphi %s3927_s22, %s4723_s22   ;;  %s3779_s1 = sphi %s3925_s1, %s4722_s1  }
  0x1a   : > { %s3005_s25 = sadd.s32 4294967294, %s3791_s24   ;;  %p63_p0 = scmp.ne.s32.totalorder %s3783_s22, %s3779_s1 }
  0x1b   : > { %p4628_p1 = scmp.eq.s32.totalorder %s3946_s2, 0  ;;  %p507_p3 = scmp.eq.s32.totalorder %s3005_s25, 1 }
  0x1c   : > { %p3006_p5 = scmp.ge.s32.totalorder %s3791_s24, 1  ;;  %p514_p7 = scmp.lt.s32.totalorder %s3791_s24, 3 }
  0x1d   : > { %p3955_p4 = por %p4628_p1, %p63_p0  ;;  %p3960_p6 = por %p507_p3, %p63_p0 }
  0x1e   : > { %p3965_p8 = pnand %p3006_p5, %p514_p7  ;;  %s3793_s28 = smov [#allocation10]  }
  0x1f   : > { %s4667_s3 = scalar_select %p3955_p4, 1, 0 }
  0x20   : > { %s4668_s26 = scalar_select %p3960_p6, 1, 0 }
  0x21   : > { %s4670_s27 = scalar_select %p3965_p8, 1, 0 }
  0x22   : > { %4669 = sst [smem:[#allocation22_spill]] %s4668_s26  ;;  %s544_s4 = sshll.u32 %s3793_s28, 4  ;;  %s3969_s4 = int_to_ptr.vmem [resolvable:$true] %s544_s4 }
  0x23   : > { %p3378_p9 = pneg %p3965_p8  ;;  %s3794_s30 = smov [#allocation11]  }
  0x24   : > { %s560_s0 = sshll.u32 %s3794_s30, 4  ;;  %s4672_s10 = sld [smem:[#allocation32_spill]]  ;;  %s3980_s0 = int_to_ptr.vmem [resolvable:$true] %s560_s0 }
  0x25   : > { %p3976_p11 = pnand %p3378_p9, %p4628_p1 }
  0x27   : > { %s4671_s29 = scalar_select %p3976_p11, 1, 0 }
  0x28   : > { %p3990_p13 = pneg %p3976_p11 }
  0x2a   : > { %s3505_s26 = scalar_lea.hbm %s4672_s10, 512 }
  0x2b   : > { %p3506_p12 = scmp.ne.s32.totalorder %s4672_s10, %s3505_s26  ;;  %p3512_p5 = scmp.lt.u32.totalorder %s3505_s26, %s4672_s10 }
  0x2c   : > { %s4673_s20 = scalar_select %p3990_p13, 1, 0 }
  0x2d   : > { %p3508_p0 = pnand %p3990_p13, %p3506_p12 }
  0x2f   : > { %p3509_p3 = pneg %p3508_p0 }
  0x31   : > { %p3514_p7 = pnand %p3512_p5, %p3509_p3 }
  0x33   : > { %3517 = shalt.err (!%p3514_p7)
}
  0x34   : > { %s3518_s1 = scalar_lea.vmem %s3969_s4, 512  ;;  %p3526_p2 = scmp.lt.s32.totalorder %s3969_s4, %s3969_s4 }
  0x35   : > { %p3519_p9 = scmp.ne.s32.totalorder %s3969_s4, %s3518_s1  ;;  %p3527_p6 = scmp.lt.s32.totalorder %s3518_s1, %s3518_s1 }
  0x37   : > { %p3521_p10 = pnand %p3519_p9, %p3990_p13  ;;  %p3528_p12 = por %p3527_p6, %p3526_p2 }
  0x39   : > { %p3522_p1 = pneg %p3521_p10 }
  0x3b   : > { %p3529_p0 = pnand %p3528_p12, %p3522_p1 }
  0x3d   : > { %3532 = shalt.err (!%p3529_p0)
}
  0x3e   : > { %s4630_s21 = smov 128   ;;  %s4632_s17 = smov 8  }
  0x3f   : > { %3381 = dma.hbm_to_vmem [thread:$0]  (!%p3976_p11), %s4672_s10, 512, %s3969_s4, [#allocation9], %s4630_s21, %s4630_s21, %s4632_s17  }
  0x40   : > { %s4674_s12 = sld [smem:[#allocation34_spill]] }
  0x46   : > { %s3533_s1 = scalar_lea.hbm %s4674_s12, 512 }
  0x47   : > { %p3534_p1 = scmp.ne.s32.totalorder %s4674_s12, %s3533_s1  ;;  %p3540_p10 = scmp.lt.u32.totalorder %s3533_s1, %s4674_s12 }
  0x49   : > { %p3536_p2 = pnand %p3534_p1, %p3990_p13 }
  0x4b   : > { %p3537_p6 = pneg %p3536_p2 }
  0x4d   : > { %p3542_p3 = pnand %p3540_p10, %p3537_p6 }
  0x4f   : > { %3545 = shalt.err (!%p3542_p3)
}
  0x50   : > { %s3546_s4 = scalar_lea.vmem %s3980_s0, 512  ;;  %p3554_p12 = scmp.lt.s32.totalorder %s3980_s0, %s3980_s0 }
  0x51   : > { %p3547_p5 = scmp.ne.s32.totalorder %s3980_s0, %s3546_s4  ;;  %p3555_p0 = scmp.lt.s32.totalorder %s3546_s4, %s3546_s4 }
  0x53   : > { %p3549_p7 = pnand %p3547_p5, %p3990_p13  ;;  %p3556_p1 = por %p3555_p0, %p3554_p12 }
  0x55   : > { %p3550_p9 = pneg %p3549_p7 }
  0x57   : > { %p3557_p2 = pnand %p3556_p1, %p3550_p9 }
  0x59   : > { %3560 = shalt.err (!%p3557_p2)
}
  0x5a   : > { %3384 = dma.hbm_to_vmem [thread:$0]  (!%p3976_p11), %s4674_s12, 512, %s3980_s0, [#allocation12], %s4630_s21, %s4630_s21, %s4632_s17  }
  0x5b   : > { %s4041_s15 = sadd.s32 1, %s3791_s24   ;;  %s50_s16 = sadd.s32 1, %s3787_s23 }
  0x5c   : > { %4675 = sst [smem:[#allocation23_spill]] %s4041_s15  ;;  %s47_s26 = ssub.s32 %s3791_s24, %s4041_s15 }
  0x5d   : > { %p57_p6 = scmp.ne.s32.totalorder %s3787_s23, %s3783_s22  ;;  %p48_p10 = scmp.eq.s32.totalorder %s47_s26, 0 }
  0x5e   : > { %p58_p3 = scmp.eq.s32.totalorder %s3791_s24, 0  ;;  %p4676_p5 = scmp.eq.s32.totalorder %s3946_s2, 1 }
  0x5f   : > { %p3408_p9 = scmp.lt.s32.totalorder %s3791_s24, 2  ;;  %s4631_s30 = sand.u32 1, %s3787_s23  }
  0x60   : > { %p4051_p7 = por %p4676_p5, %p57_p6  ;;  %p59_p12 = por %p58_p3, %p57_p6 }
  0x61   : > { %s4057_s28 = scalar_select %p48_p10, %s3787_s23, %s50_s16  }
  0x62   : > { %s4677_s25 = scalar_select %p4051_p7, 1, 0 }
  0x63   : > { %4679 = sst [smem:[#allocation25_spill]] %s4057_s28  ;;  %s4062_s0 = sshll.u32 %s4631_s30, 3 }
  0x64   : > { %4678 = sst [smem:[#allocation24_spill]] %s4677_s25  ;;  %s4065_s1 = sshll.u32 %s3791_s24, 7 }
  0x65   : > { %p4067_p0 = pnand %p3408_p9, %p59_p12  ;;  %s4639_s9 = sand.u32 1, %s3791_s24  }
  0x66   : > { %s4681_s21 = sld [smem:[#allocation27_spill]]  ;;  %s627_s30 = scalar_lea.vmem [#allocation5], %s4062_s0 }
  0x67   : > { %s4680_s4 = scalar_select %p4067_p0, 1, 0 }
  0x68   : > { %s634_s17 = sshll.u32 %s627_s30, 4  ;;  %s4083_s10 = scalar_lea.sflag [#allocation6], %s4639_s9  ;;  %s4079_s17 = int_to_ptr.vmem [resolvable:$true] %s634_s17 }
  0x69   : > { %p4089_p2 = pneg %p4067_p0 }
  0x6c   : > { %s4076_s16 = scalar_lea.hbm %s4681_s21, %s4065_s1  ;;  %s3566_s30 = scalar_lea.hbm %s4681_s21, 256 }
  0x6d   : > { %s3561_s12 = scalar_lea.hbm %s4076_s16, 128  ;;  %p3567_p3 = scmp.lt.u32.totalorder %s4076_s16, %s4681_s21 }
  0x6e   : > { %p3562_p1 = scmp.ne.s32.totalorder %s4076_s16, %s3561_s12  ;;  %p3568_p5 = scmp.lt.u32.totalorder %s3566_s30, %s3561_s12 }
  0x6f   : > { %p3570_p12 = scmp.lt.u32.totalorder %s3561_s12, %s4076_s16 }
  0x70   : > { %p3564_p6 = pnand %p4089_p2, %p3562_p1  ;;  %p3569_p9 = por %p3568_p5, %p3567_p3 }
  0x72   : > { %p3565_p10 = pneg %p3564_p6  ;;  %p3571_p7 = por %p3570_p12, %p3569_p9 }
  0x74   : > { %p3572_p4 = pnand %p3571_p7, %p3565_p10 }
  0x76   : > { %3575 = shalt.err (!%p3572_p4)
}
  0x77   : > { %s3576_s9 = scalar_lea.vmem %s4079_s17, 128  ;;  %s3797_s13 = smov [#allocation5]  }
  0x78   : > { %p3577_p1 = scmp.ne.s32.totalorder %s4079_s17, %s3576_s9  ;;  %s3581_s26 = sshll.u32 %s3797_s13, 4  ;;  %s3582_s26 = int_to_ptr.vmem [resolvable:$false] %s3581_s26 }
  0x79   : > { %s3583_s15 = scalar_lea.vmem %s3582_s26, 256  ;;  %p3584_p11 = scmp.lt.s32.totalorder %s4079_s17, %s3582_s26 }
  0x7a   : > { %p3579_p6 = pnand %p3577_p1, %p4089_p2  ;;  %p3585_p13 = scmp.lt.s32.totalorder %s3583_s15, %s3576_s9 }
  0x7c   : > { %p3580_p8 = pneg %p3579_p6  ;;  %p3586_p3 = por %p3585_p13, %p3584_p11 }
  0x7e   : > { %p3587_p5 = pnand %p3586_p3, %p3580_p8 }
  0x80   : > { %3590 = shalt.err (!%p3587_p5)
}
  0x81   : > { %3394 = dma.hbm_to_vmem [thread:$0]  (!%p4067_p0), %s4076_s16, 128, %s4079_s17, %s4083_s10  }
  0x82   : > { %s3798_s12 = smov [#allocation13]   ;;  %s3591_s13 = scalar_lea.hbm %s4613_s14, 512 }
  0x83   : > { %s576_s25 = sshll.u32 %s3798_s12, 4  ;;  %p3592_p4 = scmp.ne.s32.totalorder %s4613_s14, %s3591_s13  ;;  %s577_s25 = int_to_ptr.vmem [resolvable:$true] %s576_s25 }
  0x84   : > { %p4683_p8 = scmp.ne.s32.totalorder %s4673_s20, 0  ;;  %p3598_p7 = scmp.lt.u32.totalorder %s3591_s13, %s4613_s14 }
  0x86   : > { %p3594_p11 = pnand %p3592_p4, %p4683_p8 }
  0x88   : > { %p3595_p13 = pneg %p3594_p11 }
  0x8a   : > { %p3600_p10 = pnand %p3598_p7, %p3595_p13 }
  0x8c   : > { %3603 = shalt.err (!%p3600_p10)
}
  0x8d   : > { %s3604_s17 = scalar_lea.vmem %s577_s25, 512  ;;  %p3612_p6 = scmp.lt.s32.totalorder %s577_s25, %s577_s25 }
  0x8e   : > { %p3605_p9 = scmp.ne.s32.totalorder %s577_s25, %s3604_s17  ;;  %p3613_p3 = scmp.lt.s32.totalorder %s3604_s17, %s3604_s17 }
  0x90   : > { %p3607_p12 = pnand %p3605_p9, %p4683_p8  ;;  %p3614_p5 = por %p3613_p3, %p3612_p6 }
  0x92   : > { %p3608_p1 = pneg %p3607_p12 }
  0x94   : > { %p3615_p0 = pnand %p3614_p5, %p3608_p1 }
  0x96   : > { %3618 = shalt.err (!%p3615_p0)
}
  0x97   : > { %p4684_p4 = scmp.ne.s32.totalorder %s4671_s29, 0  ;;  %s4685_s11 = smov 8  }
  0x98   : > { %s4686_s21 = smov 128   ;;  %s4687_s13 = sld [smem:[#allocation26_spill]] }
  0x99   : > { %3387 = dma.hbm_to_vmem [thread:$0]  (!%p4684_p4), %s4613_s14, 512, %s577_s25, [#allocation12], %s4686_s21, %s4686_s21, %s4685_s11  }
  0x9a   : > { %s609_s29 = scalar_lea.vmem [#allocation2], %s4062_s0  ;;  %s4688_s15 = sand.u32 1, %s3787_s23  }
  0x9b   : > { %s616_s9 = sshll.u32 %s609_s29, 4  ;;  %s606_s17 = scalar_lea.sflag [#allocation3], %s4688_s15  ;;  %s617_s9 = int_to_ptr.vmem [resolvable:$true] %s616_s9 }
  0x9e   : > { %s4138_s26 = scalar_lea.hbm %s4687_s13, %s4065_s1  ;;  %s3624_s21 = scalar_lea.hbm %s4687_s13, 256 }
  0x9f   : > { %s3619_s16 = scalar_lea.hbm %s4138_s26, 128  ;;  %p3625_p13 = scmp.lt.u32.totalorder %s4138_s26, %s4687_s13 }
  0xa0   : > { %p3620_p0 = scmp.ne.s32.totalorder %s4138_s26, %s3619_s16  ;;  %p3626_p7 = scmp.lt.u32.totalorder %s3624_s21, %s3619_s16 }
  0xa1   : > { %p3628_p9 = scmp.lt.u32.totalorder %s3619_s16, %s4138_s26 }
  0xa2   : > { %p3622_p8 = pnand %p3620_p0, %p4089_p2  ;;  %p3627_p10 = por %p3626_p7, %p3625_p13 }
  0xa4   : > { %p3623_p11 = pneg %p3622_p8  ;;  %p3629_p12 = por %p3628_p9, %p3627_p10 }
  0xa6   : > { %p3630_p1 = pnand %p3629_p12, %p3623_p11 }
  0xa8   : > { %3633 = shalt.err (!%p3630_p1)
}
  0xa9   : > { %s3634_s30 = scalar_lea.vmem %s617_s9, 128  ;;  %s3799_s29 = smov [#allocation2]  }
  0xaa   : > { %p3635_p6 = scmp.ne.s32.totalorder %s617_s9, %s3634_s30  ;;  %s3639_s15 = sshll.u32 %s3799_s29, 4  ;;  %s3640_s15 = int_to_ptr.vmem [resolvable:$false] %s3639_s15 }
  0xab   : > { %s3641_s25 = scalar_lea.vmem %s3640_s15, 256  ;;  %p3642_p4 = scmp.lt.s32.totalorder %s617_s9, %s3640_s15 }
  0xac   : > { %p3637_p3 = pnand %p3635_p6, %p4089_p2  ;;  %p3643_p0 = scmp.lt.s32.totalorder %s3641_s25, %s3634_s30 }
  0xae   : > { %p3638_p5 = pneg %p3637_p3  ;;  %p3644_p8 = por %p3643_p0, %p3642_p4 }
  0xb0   : > { %p3645_p7 = pnand %p3644_p8, %p3638_p5 }
  0xb2   : > { %3648 = shalt.err (!%p3645_p7)
}
  0xb3   : > { %p4689_p13 = scmp.ne.s32.totalorder %s4680_s4, 0  ;;  %s4690_s21 = sld [smem:[#allocation28_spill]] }
  0xb4   : > { %s645_s20 = scalar_lea.vmem [#allocation7], %s4062_s0 }
  0xb5   : > { %3391 = dma.hbm_to_vmem [thread:$0]  (!%p4689_p13), %s4138_s26, 128, %s617_s9, %s606_s17  }
  0xb6   : > { %s652_s30 = sshll.u32 %s645_s20, 4  ;;  %s653_s30 = int_to_ptr.vmem [resolvable:$true] %s652_s30 }
  0xb9   : > { %s4164_s12 = scalar_lea.hbm %s4690_s21, %s4065_s1  ;;  %s3654_s26 = scalar_lea.hbm %s4690_s21, 256 }
  0xba   : > { %s3649_s29 = scalar_lea.hbm %s4164_s12, 128  ;;  %p3655_p12 = scmp.lt.u32.totalorder %s4164_s12, %s4690_s21 }
  0xbb   : > { %p3650_p11 = scmp.ne.s32.totalorder %s4164_s12, %s3649_s29  ;;  %p3656_p1 = scmp.lt.u32.totalorder %s3654_s26, %s3649_s29 }
  0xbc   : > { %p3658_p3 = scmp.lt.u32.totalorder %s3649_s29, %s4164_s12 }
  0xbd   : > { %p3652_p10 = pnand %p3650_p11, %p4089_p2  ;;  %p3657_p6 = por %p3656_p1, %p3655_p12 }
  0xbf   : > { %p3653_p9 = pneg %p3652_p10  ;;  %p3659_p5 = por %p3658_p3, %p3657_p6 }
  0xc1   : > { %p3660_p4 = pnand %p3659_p5, %p3653_p9 }
  0xc3   : > { %3663 = shalt.err (!%p3660_p4)
}
  0xc4   : > { %s3664_s16 = scalar_lea.vmem %s653_s30, 128  ;;  %s3800_s11 = smov [#allocation7]  }
  0xc5   : > { %p3665_p0 = scmp.ne.s32.totalorder %s653_s30, %s3664_s16  ;;  %s3669_s20 = sshll.u32 %s3800_s11, 4  ;;  %s3670_s20 = int_to_ptr.vmem [resolvable:$false] %s3669_s20 }
  0xc6   : > { %s3671_s15 = scalar_lea.vmem %s3670_s20, 256  ;;  %p3672_p11 = scmp.lt.s32.totalorder %s653_s30, %s3670_s20 }
  0xc7   : > { %p3667_p8 = pnand %p3665_p0, %p4089_p2  ;;  %p3673_p10 = scmp.lt.s32.totalorder %s3671_s15, %s3664_s16 }
  0xc9   : > { %p3668_p7 = pneg %p3667_p8  ;;  %p3674_p13 = por %p3673_p10, %p3672_p11 }
  0xcb   : > { %p3675_p1 = pnand %p3674_p13, %p3668_p7 }
  0xcd   : > { %3678 = shalt.err (!%p3675_p1)
}
  0xce   : > { %p4691_p12 = scmp.ne.s32.totalorder %s4680_s4, 0  ;;  %s4692_s26 = sld [smem:[#allocation29_spill]] }
  0xcf   : > { %s663_s17 = scalar_lea.vmem [#allocation8], %s4062_s0  ;;  %s4693_s11 = sand.u32 1, %s3791_s24  }
  0xd0   : > { %3397 = dma.hbm_to_vmem [thread:$0]  (!%p4691_p12), %s4164_s12, 128, %s653_s30, %s4083_s10  }
  0xd1   : > { %s670_s16 = sshll.u32 %s663_s17, 4  ;;  %s660_s20 = scalar_lea.sflag [#allocation9], %s4693_s11  ;;  %s671_s16 = int_to_ptr.vmem [resolvable:$true] %s670_s16 }
  0xd4   : > { %s4189_s9 = scalar_lea.hbm %s4692_s26, %s4065_s1  ;;  %s3684_s30 = scalar_lea.hbm %s4692_s26, 256 }
  0xd5   : > { %s3679_s15 = scalar_lea.hbm %s4189_s9, 128  ;;  %p3685_p3 = scmp.lt.u32.totalorder %s4189_s9, %s4692_s26 }
  0xd6   : > { %p3680_p13 = scmp.ne.s32.totalorder %s4189_s9, %s3679_s15  ;;  %p3686_p5 = scmp.lt.u32.totalorder %s3684_s30, %s3679_s15 }
  0xd7   : > { %p3688_p0 = scmp.lt.u32.totalorder %s3679_s15, %s4189_s9 }
  0xd8   : > { %p3682_p9 = pnand %p3680_p13, %p4089_p2  ;;  %p3687_p4 = por %p3686_p5, %p3685_p3 }
  0xda   : > { %p3683_p6 = pneg %p3682_p9  ;;  %p3689_p8 = por %p3688_p0, %p3687_p4 }
  0xdc   : > { %p3690_p7 = pnand %p3689_p8, %p3683_p6 }
  0xde   : > { %3693 = shalt.err (!%p3690_p7)
}
  0xdf   : > { %s3694_s0 = scalar_lea.vmem %s671_s16, 128  ;;  %s3801_s25 = smov [#allocation8]  }
  0xe0   : > { %p3695_p11 = scmp.ne.s32.totalorder %s671_s16, %s3694_s0  ;;  %s3699_s17 = sshll.u32 %s3801_s25, 4  ;;  %s3700_s17 = int_to_ptr.vmem [resolvable:$false] %s3699_s17 }
  0xe1   : > { %s3701_s11 = scalar_lea.vmem %s3700_s17, 256  ;;  %p3702_p13 = scmp.lt.s32.totalorder %s671_s16, %s3700_s17 }
  0xe2   : > { %p3697_p10 = pnand %p3695_p11, %p4089_p2  ;;  %p3703_p9 = scmp.lt.s32.totalorder %s3701_s11, %s3694_s0 }
  0xe4   : > { %p3698_p1 = pneg %p3697_p10  ;;  %p3704_p12 = por %p3703_p9, %p3702_p13 }
  0xe6   : > { %p3705_p3 = pnand %p3704_p12, %p3698_p1 }
  0xe8   : > { %3708 = shalt.err (!%p3705_p3)
}
  0xe9   : > { %p4694_p5 = scmp.ne.s32.totalorder %s4680_s4, 0  ;;  %p4695_p6 = scmp.ne.s32.totalorder %s4670_s27, 0 }
  0xea   : > { %s4214_s28 = sand.u32 (!%p4695_p6), 1, %s3783_s22   ;;  %p4696_p2 = scmp.ne.s32.totalorder (!%p4695_p6), %s4667_s3, 0 }
  0xeb   : > { %3400 = dma.hbm_to_vmem [thread:$0]  (!%p4694_p5), %s4189_s9, 128, %s671_s16, %s660_s20  }
  0xec   : > { %679 = sbr.rel (%p4695_p6) target bundleno = 4530 (0x11b2), region = 100  ;;  %s4217_s15 = sshll.u32 (!%p4695_p6), %s4214_s28, 3 }
  0xed   : > { %s682_s10 = scalar_lea.sflag (!%p4695_p6), [#allocation3], %s4214_s28  ;;  %s685_s12 = scalar_lea.vmem (!%p4695_p6), [#allocation2], %s4217_s15 }
  0xf3   : > { %3754 = dma.done.wait (%p4696_p2), %s682_s10, 128  }
  0xf4   : > { %3756 = vsyncadd (%p4696_p2), %s682_s10, 4294967168  ;;  %s690_s27 = sand.u32 1, %s3946_s2   ;;  %s694_s9 = scalar_lea.vmem [#allocation5], %s4217_s15 }
  0xf5   : > { %s691_s4 = scalar_lea.sflag [#allocation6], %s690_s27 }
  0xf6   : > { %3758 = dma.done.wait (%p4696_p2), %s691_s4, 256  }
  0xf7   : > { %3760 = vsyncadd (%p4696_p2), %s691_s4, 4294967040  ;;  %s703_s16 = scalar_lea.vmem [#allocation7], %s4217_s15  ;;  %s709_s20 = scalar_lea.sflag [#allocation9], %s690_s27 }
  0xf8   : > { %s712_s30 = scalar_lea.vmem [#allocation8], %s4217_s15 }
  0xf9   : > { %3762 = dma.done.wait (%p4696_p2), %s709_s20, 128  }
  0xfa   : > { %3764 = vsyncadd (%p4696_p2), %s709_s20, 4294967168  ;;  %p4697_p12 = scmp.eq.s32.totalorder %s3946_s2, 0 }
  0xfc   : > { %3766 = dma.done.wait (%p4697_p12), [#allocation9], 512   ;;  %p4698_p4 = pmov %p4697_p12 }
  0xfe   : > { %3768 = vsyncadd (%p4698_p4), [#allocation9], 4294966784  ;;  %p4699_p0 = pmov %p4698_p4 }
 0x100   : > { %3770 = dma.done.wait (%p4699_p0), [#allocation12], 1024   ;;  %p4700_p8 = pmov %p4699_p0 }
 0x101   : > { %v3802_v0 = vmov 0.0|0.0   ;;  %vm3803_vm0 = vmmov 0   ;;  %v3804_v1 = vmov 0.0   ;;  %s4701_s29 = sld [smem:[#allocation30_spill]]  ;;  %v4266_v8 = vld [vmem:[%s685_s12] sm:$0xff]  ;;  %vm811_vm1 = vcmask 261120  }
 0x102   : > { %3772 = vsyncadd (%p4700_p8), [#allocation12], 4294966272  ;;  %3308 = vmatprep.subr.bf16.mxu1 %v3802_v0  ;;  %3151 = vmatprep.mubr.msk.f32.mxu1 %vm3803_vm0, %v3804_v1  ;;  %v3028_v9 = vld [vmem:[%s4604_s5] ss:$0 sm:$0xff]  ;;  %s3805_s3 = smov 120   ;;  %s3806_s12 = smov 96  }
 0x103   : > { %3164 = vmatprep.subr.mxu0 %v3804_v1  ;;  %3166 = vmatprep.mubr.msk.f32.mxu0 %vm3803_vm0, %v3804_v1  ;;  %s3807_s1 = smov 80   ;;  %s4647_s0 = smov 88   ;;  %vm889_vm2 = vcmask 64512   ;;  %v885_v20 = vld [vmem:[%s703_s16] sm:$0xff]  ;;  %vm1568_vm4 = vcmask 130048   ;;  %vm1570_vm5 = vcmask 195584  }
 0x104   : > { %s4648_s25 = smov 72   ;;  %s3810_s17 = smov 112   ;;  %vm965_vm3 = vcmp.eq.f32.partialorder %v885_v20, 0.0  ;;  %vm2736_vm7 = vcmask 523264  }
 0x105   : > { %s3811_s11 = smov 104   ;;  %s3812_s16 = smov 56  }
 0x106   : > { %s3813_s10 = smov 64   ;;  %s3814_s27 = smov 48  }
 0x107   : > { %v800_v2 = vld [vmem:[%s4701_s29] sm:$0xff]  ;;  %v801_v3 = vld [vmem:[%s4701_s29 + $0x8] sm:$0xff]  ;;  %v802_v4 = vld [vmem:[%s4701_s29 + $0x10] sm:$0xff]  ;;  %s3815_s4 = smov 40  }
 0x108   : > { %v3309_v5 = vpack.c.bf16 %v801_v3, %v800_v2  ;;  %v803_v6 = vld [vmem:[%s4701_s29 + $0x18] sm:$0xff] }
 0x109   : > { %v3312_v7 = vpack.c.bf16 %v803_v6, %v802_v4 }
 0x10a   : > { %3310 = vmatpush3.bf16.msra.mxu1 %v3309_v5 }
 0x10b   : > { %3311 = vmatprep.subr.bf16.mxu1 %v3802_v0 }
 0x10e   : > { %3313 = vmatpush3.bf16.msra.mxu1 %v3312_v7 }
 0x10f   : > { %3154 = vmatprep.subr.mxu1 %v3804_v1 }
 0x111   : > { %3152 = vmatmul.mubr.msk.f32.vlgmr.msra.gmra.mrb[0].mxu1 %vm811_vm1, %v4266_v8 }
 0x112   : > { %3156 = vmatprep.mubr.msk.f32.mxu1 %vm3803_vm0, %v3804_v1 }
 0x1e4   : > { %v881_v10 = vpop.f32.mrb[0].mxu1 }
 0x1e5   : > { %v4276_v11 = vadd.f32 %v3028_v9, %v881_v10  ;;  %v3153_v12 = vpop.f32.mrb[1].mxu1 }
 0x1e7   : > { %1054 = vrot.lane.b32.xlu1 %v4276_v11, %s3805_s3  ;;  %887 = vrot.lane.b32.xlu0 %v4276_v11, %s3806_s12 }
 0x1eb   : > { %1223 = vrot.lane.b32.xlu1 %v4276_v11, %s3807_s1  ;;  %1056 = vrot.lane.b32.xlu0 %v4276_v11, %s4647_s0 }
 0x1ef   : > { %1390 = vrot.lane.b32.xlu1 %v4276_v11, %s4648_s25  ;;  %1221 = vrot.lane.b32.xlu0 %v4276_v11, %s3810_s17  ;;  %s4702_s25 = sld [smem:[#allocation33_spill]] }
 0x1f3   : > { %1388 = vrot.lane.b32.xlu0 %v4276_v11, %s3811_s11 }
 0x259   : > { %v1055_v13 = vpop.permute.xlu1 %1054  ;;  %v888_v14 = vpop.permute.xlu0 %887 }
 0x25a   : > { %3155 = vmatpush3.xpose.msk.msra.mxu1 %vm889_vm2, %v888_v14 }
 0x25b   : > { %3159 = vmatprep.subr.mxu1 %v3804_v1 }
 0x25d   : > { %3157 = vmatmul.mubr.msk.f32.vlgmr.msra.gmra.mrb[2].mxu1 %vm889_vm2, %v4276_v11  ;;  %v1057_v15 = vpop.permute.xlu0 %1056  ;;  %v1224_v16 = vpop.permute.xlu1 %1223 }
 0x25e   : > { %3165 = vmatpush3.xpose.msk.msra.mxu0 %vm889_vm2, %v1057_v15  ;;  %3161 = vmatprep.mubr.msk.f32.mxu1 %vm3803_vm0, %v3804_v1 }
 0x25f   : > { %3174 = vmatprep.subr.mxu0 %v3804_v1 }
 0x261   : > { %3167 = vmatmul.mubr.msk.f32.vlgmr.msra.gmra.mrb[0].mxu0 %vm889_vm2, %v1055_v13  ;;  %v1222_v17 = vpop.permute.xlu0 %1221  ;;  %v1391_v18 = vpop.permute.xlu1 %1390 }
 0x262   : > { %3175 = vmatpush3.xpose.msk.msra.mxu0 %vm889_vm2, %v1224_v16  ;;  %3176 = vmatprep.mubr.msk.f32.mxu0 %vm3803_vm0, %v3804_v1  ;;  %v1572_v16 = vld [vmem:[%s4605_s6] sm:$0xff] }
 0x263   : > { %3184 = vmatprep.subr.mxu0 %v3804_v1 }
 0x265   : > { %3177 = vmatmul.mubr.msk.f32.vlgmr.msra.gmra.mrb[2].mxu0 %vm889_vm2, %v1222_v17  ;;  %v1389_v19 = vpop.permute.xlu0 %1388  ;;  %v1573_v17 = vld [vmem:[%s4605_s6 + $0x8] sm:$0xff] }
 0x266   : > { %3185 = vmatpush3.xpose.msk.msra.mxu0 %vm889_vm2, %v1391_v18  ;;  %3186 = vmatprep.mubr.msk.f32.mxu0 %vm3803_vm0, %v3804_v1  ;;  %v3315_v18 = vpack.c.bf16 %v1573_v17, %v1572_v16 }
 0x267   : > { %3314 = vmatprep.subr.bf16.mxu0 %v3802_v0 }
 0x269   : > { %3187 = vmatmul.mubr.msk.f32.vlgmr.msra.gmra.mrb[4].mxu0 %vm889_vm2, %v1389_v19 }
 0x26a   : > { %3202 = vmatprep.mubr.msk.f32.mxu0 %vm3803_vm0, %v3804_v1  ;;  %3316 = vmatpush3.bf16.msra.mxu0 %v3315_v18 }
 0x26b   : > { %3317 = vmatprep.subr.bf16.mxu0 %v3802_v0 }
 0x330   : > { %v960_v21 = vpop.f32.mrb[2].mxu1 }
 0x331   : > { %v964_v22 = vmul.f32 0.35355338, %v960_v21  ;;  %v3158_v23 = vpop.f32.mrb[3].mxu1 }
 0x332   : > { %v1574_v23 = vld [vmem:[%s4605_s6 + $0x10] sm:$0xff] }
 0x333   : > { %v966_v24 = vsel %vm965_vm3, -1e+09, %v964_v22 }
 0x334   : > { %v1128_v25 = vpop.f32.mrb[0].mxu0  ;;  %v967_v26 = vsel %vm889_vm2, %v966_v24, -inf }
 0x335   : > { %v1132_v27 = vmul.f32 0.35355338, %v1128_v25  ;;  %v3168_v28 = vpop.f32.mrb[1].mxu0  ;;  %968 = vmax.xlane.f32.xlu1 %v967_v26 }
 0x337   : > { %v1133_v29 = vsel %vm965_vm3, -1e+09, %v1132_v27 }
 0x338   : > { %v1295_v30 = vpop.f32.mrb[2].mxu0  ;;  %v1134_v31 = vsel %vm889_vm2, %v1133_v29, -inf }
 0x339   : > { %v1299_v32 = vmul.f32 0.35355338, %v1295_v30  ;;  %1135 = vmax.xlane.f32.xlu0 %v1134_v31  ;;  %v3178_v33 = vpop.f32.mrb[3].mxu0 }
 0x33b   : > { %v1300_v34 = vsel %vm965_vm3, -1e+09, %v1299_v32 }
 0x33c   : > { %v1462_v35 = vpop.f32.mrb[4].mxu0  ;;  %v1301_v36 = vsel %vm889_vm2, %v1300_v34, -inf }
 0x33d   : > { %v1466_v37 = vmul.f32 0.35355338, %v1462_v35  ;;  %1302 = vmax.xlane.f32.xlu0 %v1301_v36  ;;  %v3188_v38 = vpop.f32.mrb[5].mxu0  ;;  %v3042_v36 = vld [vmem:[%s4606_s7] ss:$0 sm:$0xff] }
 0x33f   : > { %v1467_v39 = vsel %vm965_vm3, -1e+09, %v1466_v37 }
 0x340   : > { %v1468_v40 = vsel %vm889_vm2, %v1467_v39, -inf }
 0x341   : > { %1469 = vmax.xlane.f32.xlu1 %v1468_v40 }
 0x352   : > { %1145 = vrot.lane.b32.xlu1 %v4276_v11, %s3812_s16  ;;  %s4703_s16 = sld [smem:[#allocation31_spill]] }
 0x3c2   : > { %v969_v41 = vpop.xlane.xlu1 %968 }
 0x3c3   : > { %v970_v42 = vsub.f32 %v966_v24, %v969_v41  ;;  %v1575_v24 = vld [vmem:[%s4605_s6 + $0x18] sm:$0xff] }
 0x3c4   : > { %v3318_v25 = vpack.c.bf16 %v1575_v24, %v1574_v23 }
 0x3c5   : > { %v971_v43 = vmul.f32 1.442695, %v970_v42 }
 0x3c6   : > { %v1136_v44 = vpop.xlane.xlu0 %1135  ;;  %3319 = vmatpush3.bf16.msra.mxu0 %v3318_v25 }
 0x3c7   : > { %3467 = vpow2.f32 %v971_v43  ;;  %v1137_v45 = vsub.f32 %v1133_v29, %v1136_v44  ;;  %3326 = vmatprep.subr.bf16.mxu0 %v3802_v0 }
 0x3c9   : > { %v1138_v46 = vmul.f32 1.442695, %v1137_v45 }
 0x3ca   : > { %v1303_v56 = vpop.xlane.xlu0 %1302 }
 0x3cb   : > { %3469 = vpow2.f32 %v1138_v46  ;;  %v1304_v57 = vsub.f32 %v1300_v34, %v1303_v56  ;;  %v1687_v56 = vld [vmem:[%s4607_s8 + $0x10] sm:$0xff] }
 0x3cd   : > { %v1305_v58 = vmul.f32 1.442695, %v1304_v57  ;;  %v1688_v57 = vld [vmem:[%s4607_s8 + $0x18] sm:$0xff] }
 0x3ce   : > { %v1470_v47 = vpop.xlane.xlu1 %1469 }
 0x3cf   : > { %v1471_v48 = vsub.f32 %v1467_v39, %v1470_v47  ;;  %v1769_v47 = vld [vmem:[#allocation10] sm:$0xff] }
 0x3d1   : > { %v3468_v49 = vpop.eup %3467  ;;  %v1472_v50 = vmul.f32 1.442695, %v1471_v48  ;;  %v1770_v48 = vld [vmem:[#allocation10 + $0x8] sm:$0xff] }
 0x3d2   : > { %v973_v51 = vsel %vm889_vm2, %v3468_v49, 0.0  ;;  %v1146_v61 = vpop.permute.xlu1 %1145 }
 0x3d3   : > { %3471 = vpow2.f32 %v1472_v50  ;;  %974 = vadd.xlane.f32.xlu0 %v973_v51  ;;  %v1771_v50 = vld [vmem:[#allocation10 + $0x10] sm:$0xff]  ;;  %v1772_v51 = vld [vmem:[#allocation10 + $0x18] sm:$0xff] }
 0x3d4   : > { %3473 = vpow2.f32 %v1305_v58  ;;  %v3324_v58 = vpack.c.bf16 %v1688_v57, %v1687_v56 }
 0x3d5   : > { %v3470_v52 = vpop.eup %3469 }
 0x3d6   : > { %v1140_v53 = vsel %vm889_vm2, %v3470_v52, 0.0 }
 0x3d7   : > { %1141 = vadd.xlane.f32.xlu1 %v1140_v53  ;;  %v1685_v53 = vld [vmem:[%s4607_s8] sm:$0xff] }
 0x3dd   : > { %v3472_v54 = vpop.eup %3471 }
 0x3de   : > { %v1474_v55 = vsel %vm889_vm2, %v3472_v54, 0.0  ;;  %v3474_v59 = vpop.eup %3473 }
 0x3df   : > { %1475 = vadd.xlane.f32.xlu1 %v1474_v55  ;;  %v1307_v60 = vsel %vm889_vm2, %v3474_v59, 0.0 }
 0x3e9   : > { %978 = vrot.lane.b32.xlu0 %v4276_v11, %s3813_s10  ;;  %s4650_s10 = smov 16  }
 0x3f0   : > { %1312 = vrot.lane.b32.xlu1 %v4276_v11, %s3814_s27  ;;  %s4649_s27 = smov 24  }
 0x408   : > { %1308 = vadd.xlane.f32.xlu0 %v1307_v60 }
 0x41e   : > { %1479 = vrot.lane.b32.xlu0 %v4276_v11, %s3815_s4  ;;  %s4651_s4 = smov 8  }
 0x460   : > { %v975_v62 = vpop.xlane.xlu0 %974 }
 0x461   : > { %3475 = vrcp.f32 %v975_v62 }
 0x464   : > { %v979_v63 = vpop.permute.xlu0 %978  ;;  %v1142_v2 = vpop.xlane.xlu1 %1141 }
 0x465   : > { %3477 = vrcp.f32 %v1142_v2  ;;  %3160 = vmatpush3.msra.mxu1 %v979_v63  ;;  %v4400_v63 = vld [vmem:[%s4617_s18] ss:$0 sm:$0xff] }
 0x466   : > { %3169 = vmatprep.subr.mxu1 %v3804_v1 }
 0x46b   : > { %v3476_v3 = vpop.eup %3475 }
 0x46c   : > { %v977_v4 = vmul.f32 %v3476_v3, %v3468_v49  ;;  %v1476_v5 = vpop.xlane.xlu1 %1475  ;;  %v3327_v49 = vpack.c.bf16 %v1770_v48, %v1769_v47  ;;  %v4405_v3 = vld [vmem:[%s4618_s19] ss:$0 sm:$0xff] }
 0x46e   : > { %3162 = vmatmul.mubr.msk.f32.vlgmr.msra.gmra.mrb[4].mxu1 %vm889_vm2, %v977_v4 }
 0x46f   : > { %v3478_v6 = vpop.eup %3477  ;;  %3170 = vmatpush3.msra.mxu1 %v1146_v61  ;;  %3171 = vmatprep.mubr.msk.f32.mxu1 %vm3803_vm0, %v3804_v1 }
 0x470   : > { %v1144_v7 = vmul.f32 %v3478_v6, %v3470_v52  ;;  %v1313_v9 = vpop.permute.xlu1 %1312  ;;  %3179 = vmatprep.subr.mxu1 %v3804_v1  ;;  %v797_v52 = vld [vmem:[%s694_s9] sm:$0xff]  ;;  %v3048_v6 = vld [vmem:[%s4702_s25] ss:$0 sm:$0xff]  ;;  %s4710_s25 = sld [smem:[#allocation37_spill]]  ;;  %s4714_s9 = sld [smem:[#allocation39_spill]] }
 0x472   : > { %3172 = vmatmul.mubr.msk.f32.vlgmr.msra.gmra.mrb[6].mxu1 %vm889_vm2, %v1144_v7 }
 0x473   : > { %3180 = vmatpush3.msra.mxu1 %v1313_v9  ;;  %3181 = vmatprep.mubr.msk.f32.mxu1 %vm3803_vm0, %v3804_v1 }
 0x474   : > { %3189 = vmatprep.subr.mxu1 %v3804_v1 }
 0x495   : > { %v1309_v10 = vpop.xlane.xlu0 %1308 }
 0x496   : > { %3479 = vrcp.f32 %v1309_v10 }
 0x497   : > { %3481 = vrcp.f32 %v1476_v5 }
 0x499   : > { %v1480_v14 = vpop.permute.xlu0 %1479 }
 0x4a0   : > { %v3480_v11 = vpop.eup %3479 }
 0x4a1   : > { %v1311_v12 = vmul.f32 %v3480_v11, %v3474_v59  ;;  %v3482_v13 = vpop.eup %3481 }
 0x4a2   : > { %v1478_v15 = vmul.f32 %v3482_v13, %v3472_v54  ;;  %v1686_v54 = vld [vmem:[%s4607_s8 + $0x8] sm:$0xff] }
 0x4a3   : > { %3182 = vmatmul.mubr.msk.f32.vlgmr.msra.gmra.mrb[8].mxu1 %vm889_vm2, %v1311_v12  ;;  %v3321_v55 = vpack.c.bf16 %v1686_v54, %v1685_v53  ;;  %v3046_v12 = vld [vmem:[%s4703_s16] ss:$0 sm:$0xff]  ;;  %s2828_s16 = scalar_lea.sflag [#allocation4], %s4214_s28 }
 0x4a4   : > { %3190 = vmatpush3.msra.mxu1 %v1480_v14  ;;  %3191 = vmatprep.mubr.msk.f32.mxu1 %vm3803_vm0, %v3804_v1 }
 0x4a5   : > { %3320 = vmatprep.subr.bf16.mxu1 %v3802_v0 }
 0x4a7   : > { %3192 = vmatmul.mubr.msk.f32.vlgmr.msra.gmra.mrb[10].mxu1 %vm889_vm2, %v1478_v15 }
 0x4a8   : > { %3213 = vmatprep.mubr.msk.f32.mxu1 %vm3803_vm0, %v3804_v1  ;;  %3322 = vmatpush3.bf16.msra.mxu1 %v3321_v55 }
 0x4a9   : > { %3323 = vmatprep.subr.bf16.mxu1 %v3802_v0 }
 0x4ac   : > { %3325 = vmatpush3.bf16.msra.mxu1 %v3324_v58 }
 0x4ad   : > { %3227 = vmatprep.subr.mxu1 %v3804_v1 }
 0x541   : > { %v1050_v19 = vpop.f32.mrb[4].mxu1 }
 0x542   : > { %v3163_v20 = vpop.f32.mrb[5].mxu1 }
 0x545   : > { %v1217_v21 = vpop.f32.mrb[6].mxu1 }
 0x546   : > { %1556 = vrot.lane.b32.xlu1 %v1217_v21, %s4651_s4  ;;  %v3173_v22 = vpop.f32.mrb[7].mxu1  ;;  %v1853_v21 = vld [vmem:[%s712_s30] sm:$0xff]  ;;  %s4704_s30 = smov 72   ;;  %s4709_s4 = sld [smem:[#allocation35_spill]] }
 0x547   : > { %vm1931_vm6 = vcmp.eq.f32.partialorder %v1853_v21, 0.0  ;;  %v2536_v21 = vld [vmem:[#allocation11] sm:$0xff] }
 0x576   : > { %v1384_v26 = vpop.f32.mrb[8].mxu1 }
 0x577   : > { %1560 = vrot.lane.b32.xlu0 %v1384_v26, %s4650_s10  ;;  %v3183_v27 = vpop.f32.mrb[9].mxu1  ;;  %s795_s10 = scalar_lea.vmem [#allocation14], %s4217_s15  ;;  %s3819_s15 = smov [#allocation14]  }
 0x57a   : > { %v1551_v28 = vpop.f32.mrb[10].mxu1 }
 0x57b   : > { %1564 = vrot.lane.b32.xlu1 %v1551_v28, %s4649_s27  ;;  %v3193_v29 = vpop.f32.mrb[11].mxu1 }
 0x5b8   : > { %v1557_v30 = vpop.permute.xlu1 %1556 }
 0x5b9   : > { %v1567_v32 = vsel %vm889_vm2, %v1050_v19, %v1557_v30 }
 0x5e9   : > { %v1561_v31 = vpop.permute.xlu0 %1560 }
 0x5ea   : > { %v1569_v33 = vsel %vm1568_vm4, %v1567_v32, %v1561_v31 }
 0x5ed   : > { %v1565_v34 = vpop.permute.xlu1 %1564 }
 0x5ee   : > { %v1571_v35 = vsel %vm1570_vm5, %v1569_v33, %v1565_v34 }
 0x5ef   : > { %3203 = vmatmul.mubr.msk.f32.vlgmr.msra.gmra.mrb[6].mxu0 %vm811_vm1, %v1571_v35 }
 0x5f0   : > { %3224 = vmatprep.mubr.msk.f32.mxu0 %vm3803_vm0, %v3804_v1  ;;  %3328 = vmatpush3.bf16.msra.mxu0 %v3327_v49 }
 0x5f1   : > { %3329 = vmatprep.subr.bf16.mxu0 %v3802_v0 }
 0x6c2   : > { %v1652_v37 = vpop.f32.mrb[6].mxu0 }
 0x6c3   : > { %v1653_v38 = vadd.f32 %v3042_v36, %v1652_v37  ;;  %v3204_v39 = vpop.f32.mrb[7].mxu0 }
 0x6c5   : > { %v1656_v40 = vadd.f32 %v1653_v38, %v4266_v8  ;;  %v3330_v8 = vpack.c.bf16 %v1772_v51, %v1771_v50 }
 0x6c7   : > { %v1657_v41 = vsel %vm811_vm1, %v1656_v40, 0.0  ;;  %3331 = vmatpush3.bf16.msra.mxu0 %v3330_v8 }
 0x6c8   : > { %1658 = vadd.xlane.f32.xlu0 %v1657_v41  ;;  %3237 = vmatprep.subr.mxu0 %v3804_v1 }
 0x6ca   : > { %3225 = vmatmul.mubr.msk.f32.vlgmr.msra.gmra.mrb[8].mxu0 %vm811_vm1, %v797_v52 }
 0x6cb   : > { %3239 = vmatprep.mubr.msk.f32.mxu0 %vm3803_vm0, %v3804_v1 }
 0x755   : > { %v1659_v42 = vpop.xlane.xlu0 %1658 }
 0x756   : > { %v1661_v43 = vmul.f32 0.03125, %v1659_v42 }
 0x758   : > { %v1662_v44 = vsub.f32 %v1656_v40, %v1661_v43 }
 0x75a   : > { %v1663_v45 = vmul.f32 %v1662_v44, %v1662_v44 }
 0x75c   : > { %v1664_v46 = vsel %vm811_vm1, %v1663_v45, 0.0 }
 0x75d   : > { %1665 = vadd.xlane.f32.xlu1 %v1664_v46 }
 0x79d   : > { %v1849_v7 = vpop.f32.mrb[8].mxu0 }
 0x79e   : > { %v4418_v9 = vadd.f32 %v3048_v6, %v1849_v7  ;;  %v3226_v10 = vpop.f32.mrb[9].mxu0 }
 0x7a0   : > { %2022 = vrot.lane.b32.xlu0 %v4418_v9, %s3805_s3 }
 0x7a4   : > { %2189 = vrot.lane.b32.xlu0 %v4418_v9, %s3810_s17 }
 0x7a8   : > { %2356 = vrot.lane.b32.xlu0 %v4418_v9, %s3811_s11 }
 0x7ea   : > { %v1666_v59 = vpop.xlane.xlu1 %1665 }
 0x7eb   : > { %v1667_v60 = vmul.f32 0.03125, %v1666_v59 }
 0x7ed   : > { %v1668_v61 = vadd.f32 1e-05, %v1667_v60 }
 0x7ef   : > { %3483 = vrsqrt.f32 %v1668_v61 }
 0x7f9   : > { %v3484_v62 = vpop.eup %3483 }
 0x7fa   : > { %v1670_v2 = vmul.f32 %v3484_v62, %v1662_v44 }
 0x7fc   : > { %v1677_v4 = vmul.f32 %v4400_v63, %v1670_v2 }
 0x7fe   : > { %v4409_v5 = vadd.f32 %v4405_v3, %v1677_v4 }
 0x800   : > { %3214 = vmatmul.mubr.msk.f32.vlgmr.msra.gmra.mrb[12].mxu1 %vm811_vm1, %v4409_v5 }
 0x801   : > { %3229 = vmatprep.mubr.msk.f32.mxu1 %vm3803_vm0, %v3804_v1  ;;  %3228 = vmatpush3.xpose.msk.msra.mxu1 %vm889_vm2, %v4418_v9 }
 0x802   : > { %3232 = vmatprep.subr.mxu1 %v3804_v1 }
 0x812   : > { %v2023_v11 = vpop.permute.xlu0 %2022 }
 0x813   : > { %3238 = vmatpush3.xpose.msk.msra.mxu0 %vm889_vm2, %v2023_v11 }
 0x814   : > { %3247 = vmatprep.subr.mxu0 %v3804_v1 }
 0x816   : > { %v2190_v16 = vpop.permute.xlu0 %2189 }
 0x81a   : > { %v2357_v19 = vpop.permute.xlu0 %2356 }
 0x8d3   : > { %v1765_v13 = vpop.f32.mrb[12].mxu1 }
 0x8d4   : > { %v1766_v14 = vadd.f32 %v3046_v12, %v1765_v13  ;;  %v3215_v15 = vpop.f32.mrb[13].mxu1 }
 0x8d6   : > { %2020 = vrot.lane.b32.xlu1 %v1766_v14, %s3805_s3  ;;  %3230 = vmatmul.mubr.msk.f32.vlgmr.msra.gmra.mrb[14].mxu1 %vm889_vm2, %v1766_v14  ;;  %s4705_s3 = smov 88  }
 0x8d7   : > { %3234 = vmatprep.mubr.msk.f32.mxu1 %vm3803_vm0, %v3804_v1 }
 0x8da   : > { %2187 = vrot.lane.b32.xlu1 %v1766_v14, %s3810_s17  ;;  %s4708_s17 = smov 24  }
 0x8de   : > { %2354 = vrot.lane.b32.xlu1 %v1766_v14, %s3811_s11  ;;  %s3069_s11 = sshll.u32 %s3946_s2, 7 }
 0x8df   : > { %s4554_s20 = scalar_lea.hbm %s4714_s9, %s3069_s11 }
 0x948   : > { %v2021_v17 = vpop.permute.xlu1 %2020 }
 0x949   : > { %3240 = vmatmul.mubr.msk.f32.vlgmr.msra.gmra.mrb[10].mxu0 %vm889_vm2, %v2021_v17 }
 0x94a   : > { %3248 = vmatpush3.xpose.msk.msra.mxu0 %vm889_vm2, %v2190_v16  ;;  %3249 = vmatprep.mubr.msk.f32.mxu0 %vm3803_vm0, %v3804_v1 }
 0x94b   : > { %3257 = vmatprep.subr.mxu0 %v3804_v1 }
 0x94c   : > { %v2188_v18 = vpop.permute.xlu1 %2187 }
 0x94d   : > { %3250 = vmatmul.mubr.msk.f32.vlgmr.msra.gmra.mrb[12].mxu0 %vm889_vm2, %v2188_v18 }
 0x94e   : > { %3258 = vmatpush3.xpose.msk.msra.mxu0 %vm889_vm2, %v2357_v19  ;;  %3259 = vmatprep.mubr.msk.f32.mxu0 %vm3803_vm0, %v3804_v1 }
 0x94f   : > { %3332 = vmatprep.subr.bf16.mxu0 %v3802_v0 }
 0x950   : > { %v2355_v20 = vpop.permute.xlu1 %2354 }
 0x951   : > { %3260 = vmatmul.mubr.msk.f32.vlgmr.msra.gmra.mrb[14].mxu0 %vm889_vm2, %v2355_v20 }
 0x952   : > { %3275 = vmatprep.mubr.msk.f32.mxu0 %vm3803_vm0, %v3804_v1 }
 0x9a9   : > { %v1926_v22 = vpop.f32.mrb[14].mxu1 }
 0x9aa   : > { %v1930_v23 = vmul.f32 0.35355338, %v1926_v22  ;;  %v3231_v24 = vpop.f32.mrb[15].mxu1  ;;  %v2537_v22 = vld [vmem:[#allocation11 + $0x8] sm:$0xff] }
 0x9ab   : > { %v2538_v24 = vld [vmem:[#allocation11 + $0x10] sm:$0xff] }
 0x9ac   : > { %v1932_v25 = vsel %vm1931_vm6, -1e+09, %v1930_v23  ;;  %v3333_v23 = vpack.c.bf16 %v2537_v22, %v2536_v21 }
 0x9ad   : > { %v1933_v26 = vsel %vm889_vm2, %v1932_v25, -inf }
 0x9ae   : > { %1934 = vmax.xlane.f32.xlu0 %v1933_v26  ;;  %3334 = vmatpush3.bf16.msra.mxu0 %v3333_v23 }
 0x9af   : > { %3335 = vmatprep.subr.bf16.mxu0 %v3802_v0 }
 0xa1c   : > { %v2094_v27 = vpop.f32.mrb[10].mxu0 }
 0xa1d   : > { %v2098_v28 = vmul.f32 0.35355338, %v2094_v27  ;;  %v3241_v29 = vpop.f32.mrb[11].mxu0 }
 0xa1f   : > { %v2099_v30 = vsel %vm1931_vm6, -1e+09, %v2098_v28 }
 0xa20   : > { %v2261_v31 = vpop.f32.mrb[12].mxu0  ;;  %v2100_v32 = vsel %vm889_vm2, %v2099_v30, -inf }
 0xa21   : > { %v2265_v33 = vmul.f32 0.35355338, %v2261_v31  ;;  %2101 = vmax.xlane.f32.xlu1 %v2100_v32  ;;  %v3251_v34 = vpop.f32.mrb[13].mxu0 }
 0xa23   : > { %v2266_v35 = vsel %vm1931_vm6, -1e+09, %v2265_v33 }
 0xa24   : > { %v2428_v36 = vpop.f32.mrb[14].mxu0  ;;  %v2267_v37 = vsel %vm889_vm2, %v2266_v35, -inf }
 0xa25   : > { %v2432_v38 = vmul.f32 0.35355338, %v2428_v36  ;;  %v3261_v39 = vpop.f32.mrb[15].mxu0  ;;  %2268 = vmax.xlane.f32.xlu0 %v2267_v37 }
 0xa26   : > { %v3062_v39 = vld [vmem:[%s4709_s4] ss:$0 sm:$0xff]  ;;  %s2841_s4 = sshll.u32 %s795_s10, 4  ;;  %s4556_s4 = int_to_ptr.vmem [resolvable:$true] %s2841_s4 }
 0xa27   : > { %v2433_v40 = vsel %vm1931_vm6, -1e+09, %v2432_v38  ;;  %s3709_s2 = scalar_lea.vmem %s4556_s4, 128 }
 0xa28   : > { %v2434_v41 = vsel %vm889_vm2, %v2433_v40, -inf  ;;  %p3710_p7 = scmp.ne.s32.totalorder %s4556_s4, %s3709_s2 }
 0xa29   : > { %2435 = vmax.xlane.f32.xlu0 %v2434_v41 }
 0xa32   : > { %1944 = vrot.lane.b32.xlu1 %v4418_v9, %s3806_s12  ;;  %s4706_s12 = smov 8  }
 0xa3b   : > { %v1935_v42 = vpop.xlane.xlu0 %1934 }
 0xa3c   : > { %v1936_v43 = vsub.f32 %v1932_v25, %v1935_v42  ;;  %v2539_v25 = vld [vmem:[#allocation11 + $0x18] sm:$0xff] }
 0xa3d   : > { %v3336_v26 = vpack.c.bf16 %v2539_v25, %v2538_v24 }
 0xa3e   : > { %v1937_v44 = vmul.f32 1.442695, %v1936_v43 }
 0xa3f   : > { %3337 = vmatpush3.bf16.msra.mxu0 %v3336_v26 }
 0xa40   : > { %3485 = vpow2.f32 %v1937_v44  ;;  %3344 = vmatprep.subr.bf16.mxu0 %v3802_v0 }
 0xa4a   : > { %v3486_v45 = vpop.eup %3485 }
 0xa4b   : > { %v1939_v46 = vsel %vm889_vm2, %v3486_v45, 0.0 }
 0xa56   : > { %1940 = vadd.xlane.f32.xlu1 %v1939_v46 }
 0xaae   : > { %v2102_v47 = vpop.xlane.xlu1 %2101 }
 0xaaf   : > { %v2103_v48 = vsub.f32 %v2099_v30, %v2102_v47 }
 0xab1   : > { %v2104_v49 = vmul.f32 1.442695, %v2103_v48 }
 0xab2   : > { %v1945_v50 = vpop.permute.xlu1 %1944  ;;  %v2269_v51 = vpop.xlane.xlu0 %2268 }
 0xab3   : > { %3487 = vpow2.f32 %v2104_v49  ;;  %v2270_v8 = vsub.f32 %v2266_v35, %v2269_v51  ;;  %3233 = vmatpush3.msra.mxu1 %v1945_v50  ;;  %v2637_v50 = vld [vmem:[#allocation13 + $0x8] sm:$0xff] }
 0xab4   : > { %3242 = vmatprep.subr.mxu1 %v3804_v1 }
 0xab5   : > { %v2271_v52 = vmul.f32 1.442695, %v2270_v8  ;;  %v2638_v8 = vld [vmem:[#allocation13 + $0x10] sm:$0xff] }
 0xab6   : > { %v2436_v53 = vpop.xlane.xlu0 %2435 }
 0xab7   : > { %3489 = vpow2.f32 %v2271_v52  ;;  %v2437_v54 = vsub.f32 %v2433_v40, %v2436_v53  ;;  %v2639_v52 = vld [vmem:[#allocation13 + $0x18] sm:$0xff] }
 0xab8   : > { %v3342_v53 = vpack.c.bf16 %v2639_v52, %v2638_v8 }
 0xab9   : > { %v2438_v55 = vmul.f32 1.442695, %v2437_v54  ;;  %v2722_v54 = vld [vmem:[%s4710_s25 + $0x8] sm:$0xff] }
 0xabb   : > { %3491 = vpow2.f32 %v2438_v55  ;;  %v2723_v55 = vld [vmem:[%s4710_s25 + $0x10] sm:$0xff] }
 0xabd   : > { %v3488_v56 = vpop.eup %3487 }
 0xabe   : > { %v2106_v57 = vsel %vm889_vm2, %v3488_v56, 0.0 }
 0xabf   : > { %2107 = vadd.xlane.f32.xlu0 %v2106_v57  ;;  %v2724_v57 = vld [vmem:[%s4710_s25 + $0x18] sm:$0xff] }
 0xac1   : > { %v3490_v58 = vpop.eup %3489 }
 0xac2   : > { %v2273_v59 = vsel %vm889_vm2, %v3490_v58, 0.0 }
 0xac3   : > { %2274 = vadd.xlane.f32.xlu1 %v2273_v59  ;;  %v2725_v59 = vld [vmem:[%s4710_s25 + $0x20] sm:$0xff] }
 0xac5   : > { %v3492_v60 = vpop.eup %3491 }
 0xac6   : > { %v2440_v61 = vsel %vm889_vm2, %v3492_v60, 0.0 }
 0xac7   : > { %2441 = vadd.xlane.f32.xlu0 %v2440_v61 }
 0xad4   : > { %2278 = vrot.lane.b32.xlu1 %v4418_v9, %s3807_s1  ;;  %s4707_s1 = smov 16  }
 0xad8   : > { %2445 = vrot.lane.b32.xlu1 %v4418_v9, %s4704_s30  ;;  %s4711_s30 = sld [smem:[#allocation36_spill]] }
 0xadd   : > { %2111 = vrot.lane.b32.xlu0 %v4418_v9, %s4705_s3 }
 0xae3   : > { %v1941_v62 = vpop.xlane.xlu1 %1940 }
 0xae4   : > { %3493 = vrcp.f32 %v1941_v62 }
 0xaee   : > { %v3494_v2 = vpop.eup %3493 }
 0xaef   : > { %v1943_v4 = vmul.f32 %v3494_v2, %v3486_v45 }
 0xaf1   : > { %3235 = vmatmul.mubr.msk.f32.vlgmr.msra.gmra.mrb[16].mxu1 %vm889_vm2, %v1943_v4 }
 0xaf2   : > { %3244 = vmatprep.mubr.msk.f32.mxu1 %vm3803_vm0, %v3804_v1 }
 0xb4c   : > { %v2108_v6 = vpop.xlane.xlu0 %2107 }
 0xb4d   : > { %3495 = vrcp.f32 %v2108_v6 }
 0xb50   : > { %v2275_v7 = vpop.xlane.xlu1 %2274 }
 0xb51   : > { %3497 = vrcp.f32 %v2275_v7 }
 0xb54   : > { %v2442_v10 = vpop.xlane.xlu0 %2441  ;;  %v2279_v13 = vpop.permute.xlu1 %2278 }
 0xb55   : > { %3499 = vrcp.f32 %v2442_v10 }
 0xb57   : > { %v3496_v11 = vpop.eup %3495 }
 0xb58   : > { %v2110_v12 = vmul.f32 %v3496_v11, %v3488_v56  ;;  %v2112_v14 = vpop.permute.xlu0 %2111  ;;  %v2446_v16 = vpop.permute.xlu1 %2445 }
 0xb59   : > { %3243 = vmatpush3.msra.mxu1 %v2112_v14  ;;  %v3064_v14 = vld [vmem:[%s4711_s30] ss:$0 sm:$0xff]  ;;  %s3713_s30 = sshll.u32 %s3819_s15, 4  ;;  %s3714_s30 = int_to_ptr.vmem [resolvable:$false] %s3713_s30 }
 0xb5a   : > { %3245 = vmatmul.mubr.msk.f32.vlgmr.msra.gmra.mrb[18].mxu1 %vm889_vm2, %v2110_v12  ;;  %3252 = vmatprep.subr.mxu1 %v3804_v1  ;;  %v2727_v12 = vld [vmem:[%s4710_s25 + $0x30] sm:$0xff]  ;;  %s3715_s3 = scalar_lea.vmem %s3714_s30, 256  ;;  %p3716_p13 = scmp.lt.s32.totalorder %s4556_s4, %s3714_s30 }
 0xb5b   : > { %v3498_v9 = vpop.eup %3497  ;;  %3253 = vmatpush3.msra.mxu1 %v2279_v13  ;;  %3254 = vmatprep.mubr.msk.f32.mxu1 %vm3803_vm0, %v3804_v1  ;;  %p3717_p9 = scmp.lt.s32.totalorder %s3715_s3, %s3709_s2 }
 0xb5c   : > { %v2277_v15 = vmul.f32 %v3498_v9, %v3490_v58  ;;  %3262 = vmatprep.subr.mxu1 %v3804_v1  ;;  %v3348_v58 = vpack.c.bf16 %v2724_v57, %v2723_v55 }
 0xb5d   : > { %p3718_p3 = por %p3717_p9, %p3716_p13 }
 0xb5e   : > { %3255 = vmatmul.mubr.msk.f32.vlgmr.msra.gmra.mrb[20].mxu1 %vm889_vm2, %v2277_v15 }
 0xb5f   : > { %v3500_v17 = vpop.eup %3499  ;;  %3263 = vmatpush3.msra.mxu1 %v2446_v16  ;;  %3264 = vmatprep.mubr.msk.f32.mxu1 %vm3803_vm0, %v3804_v1 }
 0xb60   : > { %v2444_v18 = vmul.f32 %v3500_v17, %v3492_v60  ;;  %3338 = vmatprep.subr.bf16.mxu1 %v3802_v0  ;;  %v2726_v60 = vld [vmem:[%s4710_s25 + $0x28] sm:$0xff] }
 0xb61   : > { %v3351_v61 = vpack.c.bf16 %v2726_v60, %v2725_v59 }
 0xb62   : > { %3265 = vmatmul.mubr.msk.f32.vlgmr.msra.gmra.mrb[22].mxu1 %vm889_vm2, %v2444_v18 }
 0xb63   : > { %3286 = vmatprep.mubr.msk.f32.mxu1 %vm3803_vm0, %v3804_v1 }
 0xbc4   : > { %v2016_v19 = vpop.f32.mrb[16].mxu1 }
 0xbc5   : > { %v3236_v20 = vpop.f32.mrb[17].mxu1 }
 0xc2d   : > { %v2183_v27 = vpop.f32.mrb[18].mxu1 }
 0xc2e   : > { %2522 = vrot.lane.b32.xlu0 %v2183_v27, %s4706_s12  ;;  %v3246_v28 = vpop.f32.mrb[19].mxu1 }
 0xc31   : > { %v2350_v29 = vpop.f32.mrb[20].mxu1 }
 0xc32   : > { %2526 = vrot.lane.b32.xlu1 %v2350_v29, %s4707_s1  ;;  %v3256_v30 = vpop.f32.mrb[21].mxu1  ;;  %s4712_s1 = sld [smem:[#allocation38_spill]] }
 0xc35   : > { %v2517_v31 = vpop.f32.mrb[22].mxu1 }
 0xc36   : > { %2530 = vrot.lane.b32.xlu0 %v2517_v31, %s4708_s17  ;;  %v3266_v32 = vpop.f32.mrb[23].mxu1  ;;  %s4713_s17 = sld [smem:[#allocation24_spill]] }
 0xc38   : > { %v3066_v18 = vld [vmem:[%s4712_s1] ss:$0 sm:$0xff] }
 0xc3c   : > { %p4715_p11 = scmp.ne.s32.totalorder %s4713_s17, 0 }
 0xc3e   : > { %p3711_p10 = pnand %p3710_p7, %p4715_p11 }
 0xc40   : > { %p3712_p1 = pneg %p3711_p10 }
 0xc42   : > { %p3719_p5 = pnand %p3718_p3, %p3712_p1 }
 0xca0   : > { %v2523_v33 = vpop.permute.xlu0 %2522 }
 0xca1   : > { %v2533_v35 = vsel %vm889_vm2, %v2016_v19, %v2523_v33 }
 0xca4   : > { %v2527_v34 = vpop.permute.xlu1 %2526 }
 0xca5   : > { %v2534_v36 = vsel %vm1568_vm4, %v2533_v35, %v2527_v34 }
 0xca8   : > { %v2531_v37 = vpop.permute.xlu0 %2530 }
 0xca9   : > { %v2535_v38 = vsel %vm1570_vm5, %v2534_v36, %v2531_v37 }
 0xcaa   : > { %3276 = vmatmul.mubr.msk.f32.vlgmr.msra.gmra.mrb[16].mxu0 %vm811_vm1, %v2535_v38 }
 0xcab   : > { %3305 = vmatprep.mubr.msk.f32.mxu0 %vm3803_vm0, %v3804_v1  ;;  %v2636_v1 = vld [vmem:[#allocation13] sm:$0xff] }
 0xcac   : > { %v3339_v51 = vpack.c.bf16 %v2637_v50, %v2636_v1 }
 0xcae   : > { %3340 = vmatpush3.bf16.msra.mxu1 %v3339_v51 }
 0xcaf   : > { %3341 = vmatprep.subr.bf16.mxu1 %v3802_v0 }
 0xcb2   : > { %3343 = vmatpush3.bf16.msra.mxu1 %v3342_v53 }
 0xd7d   : > { %v2616_v40 = vpop.f32.mrb[16].mxu0 }
 0xd7e   : > { %v2617_v41 = vadd.f32 %v3062_v39, %v2616_v40  ;;  %v3277_v42 = vpop.f32.mrb[17].mxu0 }
 0xd80   : > { %v2620_v43 = vadd.f32 %v2617_v41, %v4409_v5  ;;  %v2721_v5 = vld [vmem:[%s4710_s25] sm:$0xff] }
 0xd81   : > { %v3345_v56 = vpack.c.bf16 %v2722_v54, %v2721_v5 }
 0xd82   : > { %v2621_v44 = vsel %vm811_vm1, %v2620_v43, 0.0 }
 0xd83   : > { %2622 = vadd.xlane.f32.xlu1 %v2621_v44  ;;  %3346 = vmatpush3.bf16.msra.mxu0 %v3345_v56 }
 0xd84   : > { %3347 = vmatprep.subr.bf16.mxu0 %v3802_v0 }
 0xd87   : > { %3349 = vmatpush3.bf16.msra.mxu0 %v3348_v58 }
 0xd88   : > { %3350 = vmatprep.subr.bf16.mxu0 %v3802_v0 }
 0xd8b   : > { %3352 = vmatpush3.bf16.msra.mxu0 %v3351_v61 }
 0xd8c   : > { %3353 = vmatprep.subr.bf16.mxu0 %v3802_v0  ;;  %v2728_v0 = vld [vmem:[%s4710_s25 + $0x38] sm:$0xff] }
 0xd8d   : > { %v3354_v13 = vpack.c.bf16 %v2728_v0, %v2727_v12 }
 0xd8f   : > { %3355 = vmatpush3.bf16.msra.mxu0 %v3354_v13 }
 0xe10   : > { %v2623_v45 = vpop.xlane.xlu1 %2622 }
 0xe11   : > { %v2624_v46 = vmul.f32 0.03125, %v2623_v45 }
 0xe13   : > { %v2625_v47 = vsub.f32 %v2620_v43, %v2624_v46 }
 0xe15   : > { %v2626_v48 = vmul.f32 %v2625_v47, %v2625_v47 }
 0xe17   : > { %v2627_v49 = vsel %vm811_vm1, %v2626_v48, 0.0 }
 0xe18   : > { %2628 = vadd.xlane.f32.xlu0 %v2627_v49 }
 0xea5   : > { %v2629_v62 = vpop.xlane.xlu0 %2628 }
 0xea6   : > { %v2630_v2 = vmul.f32 0.03125, %v2629_v62 }
 0xea8   : > { %v2631_v4 = vadd.f32 1e-05, %v2630_v2 }
 0xeaa   : > { %3501 = vrsqrt.f32 %v2631_v4 }
 0xeb4   : > { %v3502_v6 = vpop.eup %3501 }
 0xeb5   : > { %v2633_v7 = vmul.f32 %v3502_v6, %v2625_v47 }
 0xeb7   : > { %v2634_v10 = vmul.f32 %v4400_v63, %v2633_v7 }
 0xeb9   : > { %v2635_v11 = vadd.f32 %v4405_v3, %v2634_v10 }
 0xebb   : > { %3287 = vmatmul.mubr.msk.f32.vlgmr.msra.gmra.mrb[24].mxu1 %vm811_vm1, %v2635_v11 }
 0xf8e   : > { %v2716_v9 = vpop.f32.mrb[24].mxu1 }
 0xf8f   : > { %v2717_v15 = vadd.f32 %v3064_v14, %v2716_v9  ;;  %v3288_v16 = vpop.f32.mrb[25].mxu1 }
 0xf91   : > { %v2720_v17 = vmax.f32 %v2717_v15, 0.0 }
 0xf93   : > { %3306 = vmatmul.mubr.msk.f32.vlgmr.msra.gmra.mrb[18].mxu0 %vm2736_vm7, %v2720_v17 }
0x1066   : > { %v2806_v19 = vpop.f32.mrb[18].mxu0 }
0x1067   : > { %v2807_v20 = vadd.f32 %v3066_v18, %v2806_v19  ;;  %v3307_v21 = vpop.f32.mrb[19].mxu0 }
0x1069   : > { %v2810_v22 = vadd.f32 %v2807_v20, %v2635_v11 }
0x106b   : > { %v2811_v23 = vsel %vm811_vm1, %v2810_v22, 0.0 }
0x106c   : > { %2812 = vadd.xlane.f32.xlu0 %v2811_v23 }
0x10f9   : > { %v2813_v24 = vpop.xlane.xlu0 %2812 }
0x10fa   : > { %v2814_v25 = vmul.f32 0.03125, %v2813_v24 }
0x10fc   : > { %v2815_v26 = vsub.f32 %v2810_v22, %v2814_v25 }
0x10fe   : > { %v2816_v27 = vmul.f32 %v2815_v26, %v2815_v26 }
0x1100   : > { %v2817_v28 = vsel %vm811_vm1, %v2816_v27, 0.0 }
0x1101   : > { %2818 = vadd.xlane.f32.xlu1 %v2817_v28 }
0x118e   : > { %v2819_v29 = vpop.xlane.xlu1 %2818 }
0x118f   : > { %v2820_v30 = vmul.f32 0.03125, %v2819_v29 }
0x1191   : > { %v2821_v31 = vadd.f32 1e-05, %v2820_v30 }
0x1193   : > { %3503 = vrsqrt.f32 %v2821_v31 }
0x119d   : > { %v3504_v32 = vpop.eup %3503 }
0x119e   : > { %v2823_v33 = vmul.f32 %v3504_v32, %v2815_v26 }
0x11a0   : > { %v2824_v34 = vmul.f32 %v4400_v63, %v2823_v33 }
0x11a2   : > { %v2825_v35 = vadd.f32 %v4405_v3, %v2824_v34 }
0x11a4   : > { %2826 = vst.msk [vmem:[%s795_s10] sm:$0xff] %vm811_vm1, %v2825_v35 }
0x11a5   : > { %3722 = shalt.err (!%p3719_p5)
}
0x11a6   : > { %s3723_s28 = scalar_lea.hbm %s4554_s20, 128  ;;  %s3727_s11 = scalar_lea.hbm %s4714_s9, 256 }
0x11a7   : > { %p3724_p6 = scmp.ne.s32.totalorder %s4554_s20, %s3723_s28  ;;  %p3728_p4 = scmp.lt.u32.totalorder %s4554_s20, %s4714_s9 }
0x11a8   : > { %p3729_p0 = scmp.lt.u32.totalorder %s3727_s11, %s3723_s28  ;;  %p3731_p7 = scmp.lt.u32.totalorder %s3723_s28, %s4554_s20 }
0x11a9   : > { %p3725_p2 = pnand %p3724_p6, %p4715_p11 }
0x11aa   : > { %p3730_p8 = por %p3729_p0, %p3728_p4 }
0x11ab   : > { %p3726_p12 = pneg %p3725_p2 }
0x11ac   : > { %p3732_p10 = por %p3731_p7, %p3730_p8 }
0x11ae   : > { %p3733_p1 = pnand %p3732_p10, %p3726_p12 }
0x11b0   : > { %3736 = shalt.err (!%p3733_p1)
}
0x11b1   : > { %3376 = dma.vmem_to_hbm [thread:$0]  (%p4715_p11), %s4556_s4, 128, %s4554_s20, %s2828_s16  }
0x11b2 PF: > { %s4716_s0 = sld [smem:[#allocation21_spill]]  ;;  %s4717_s2 = sld [smem:[#allocation22_spill]] }
0x11b3   : > { %p4719_p9 = scmp.ge.s32.totalorder %s3791_s24, 2 }
0x11b8   : > { %s2853_s15 = sand.u32 1, %s4716_s0   ;;  %p4718_p13 = scmp.ne.s32.totalorder %s4717_s2, 0 }
0x11b9   : > { %s2854_s30 = scalar_lea.sflag [#allocation4], %s2853_s15 }
0x11ba   : > { %p3402_p3 = pnand %p4719_p9, %p4718_p13 }
0x11bc   : > { %3774 = dma.done.wait (!%p3402_p3), %s2854_s30, 128  }
0x11bd   : > { %3776 = vsyncadd (!%p3402_p3), %s2854_s30, 4294967168  ;;  %s4720_s24 = sld [smem:[#allocation23_spill]]  ;;  %s4721_s3 = sld [smem:[#allocation25_spill]] }
0x11be   : > { %s4722_s1 = smov %s3783_s22  ;;  %s4723_s22 = smov %s3787_s23 }
0x11c3   : > { %p40_p5 = scmp.ge.s32.totalorder %s4720_s24, 4   ;;  %s4724_s23 = smov %s4721_s3 }
0x11c5   :  { %42 = sbr.rel (!%p40_p5) target bundleno = 25 (0x19), region = 194 }
0x11cc   :  { %2859 = vsyncpa [#allocation3], 1 }
0x11cd   :  { %2861 = vsyncpa [#allocation3 + $0x1], 1 }
0x11ce   :  { %2862 = vsyncpa [#allocation6], 1 }
0x11cf   :  { %2864 = vsyncpa [#allocation6 + $0x1], 1 }
0x11d0   :  { %2865 = vsyncpa [#allocation9], 1 }
0x11d1   :  { %2867 = vsyncpa [#allocation9 + $0x1], 1 }
0x11d2   :  { %2868 = vsyncpa [#allocation12], 1 }
0x11d3   :  { %2869 = vsyncpa [#allocation4], 1 }
0x11d4   :  { %2871 = vsyncpa [#allocation4 + $0x1], 1 }

</bundles_post_ra>
